<compile_context>
chip_gen: v7x
topology: tpu7x:2x2x1
jax: 0.10.0
libtpu: 0.0.40
codegen_flags: <defaults>
</compile_context>

<pallas_src>
import functools
import math

import jax
import jax.numpy as jnp
from jax.experimental import pallas as pl
from jax.experimental.pallas import tpu as pltpu


def _gelu_tanh(x):
    # TODO(synk): PyTorch nn.GELU()/F.gelu default is the exact erf-based GELU;
    # the tanh approximation (max elementwise error ~3e-4) is used here because
    # erf lowering is not guaranteed in Mosaic. tanh runs on the EUP slot.
    c = 0.7978845608028654  # sqrt(2/pi)
    return 0.5 * x * (1.0 + jnp.tanh(c * (x + 0.044715 * x * x * x)))


def _ff_kernel(x_ref, w1_ref, b1_ref, w2_ref, b2_ref, o_ref, acc_ref, *, glu):
    """Grid = (row_tiles, hidden_tiles). Hidden axis is a reduction (arbitrary)."""
    hj = pl.program_id(1)

    @pl.when(hj == 0)
    def _init():
        acc_ref[...] = jnp.zeros_like(acc_ref)

    # bf16 operands on the MXU, f32 accumulation.
    xb = x_ref[...].astype(jnp.bfloat16)                              # (tm, D)
    h1 = jnp.dot(xb, w1_ref[...],
                 preferred_element_type=jnp.float32) + b1_ref[...]    # (tm, c1*th) f32
    if glu:
        th = h1.shape[-1] // 2
        h = h1[:, :th] * _gelu_tanh(h1[:, th:])                       # value * gelu(gate)
    else:
        h = _gelu_tanh(h1)

    acc_ref[...] += jnp.dot(h.astype(jnp.bfloat16), w2_ref[...],
                            preferred_element_type=jnp.float32)       # (tm, Dout) f32

    @pl.when(hj == pl.num_programs(1) - 1)
    def _finalize():
        o_ref[...] = (acc_ref[...] + b2_ref[...]).astype(o_ref.dtype)


def _pick_tile(total, target, quantum):
    """Largest t <= target with t % quantum == 0 and total % t == 0, else `total`."""
    t = min(target, total)
    t = (t // quantum) * quantum
    while t >= quantum:
        if total % t == 0:
            return t
        t -= quantum
    return total


def feed_forward(x, params, *, glu=False, tile_m=256, tile_h=256):
    """Pallas FeedForward. x: (..., dim) float32. params use PyTorch Linear layout."""
    *lead, D = x.shape
    M = 1
    for s in lead:
        M *= int(s)
    x2 = x.reshape(M, D).astype(jnp.float32)

    w1 = jnp.asarray(params["w1"], jnp.float32)   # (out1, D)   out1 = inner or 2*inner
    b1 = jnp.asarray(params["b1"], jnp.float32)   # (out1,)
    w2 = jnp.asarray(params["w2"], jnp.float32)   # (Dout, inner)
    b2 = jnp.asarray(params["b2"], jnp.float32)   # (Dout,)
    Dout, inner = w2.shape
    out1 = w1.shape[0]
    assert w1.shape[1] == D
    assert out1 == (2 * inner if glu else inner)

    tm = _pick_tile(M, tile_m, 8)          # row tile (sublane-aligned)
    th = _pick_tile(inner, tile_h, 128)    # hidden tile (lane-aligned)
    n_m, n_h = M // tm, inner // th
    c1 = 2 if glu else 1

    # Linear computes x @ W^T + b -> keep transposed weights in the kernel.
    w1T = w1.T                              # (D, out1)
    b1r = b1.reshape(1, out1)
    if glu:
        # Interleave value / gate columns per hidden tile: one fused matmul/tile.
        w1p = jnp.concatenate(
            [w1T[:, :inner].reshape(D, n_h, th),
             w1T[:, inner:].reshape(D, n_h, th)], axis=-1).reshape(D, out1)
        b1p = jnp.concatenate(
            [b1r[:, :inner].reshape(1, n_h, th),
             b1r[:, inner:].reshape(1, n_h, th)], axis=-1).reshape(1, out1)
    else:
        w1p, b1p = w1T, b1r

    w1p = w1p.astype(jnp.bfloat16)          # bf16 MXU operands
    w2T = w2.T.astype(jnp.bfloat16)         # (inner, Dout)
    b2r = b2.reshape(1, Dout)               # biases stay f32

    kernel = functools.partial(_ff_kernel, glu=glu)

    flops = 2 * M * D * c1 * inner + 2 * M * inner * Dout
    transcendentals = M * inner             # one tanh per hidden activation
    bytes_accessed = (x2.size * 4 + M * Dout * 4
                      + w1p.size * 2 + w2T.size * 2
                      + b1p.size * 4 + b2r.size * 4)

    out = pl.pallas_call(
        kernel,
        out_shape=jax.ShapeDtypeStruct((M, Dout), jnp.float32),
        grid_spec=pltpu.PrefetchScalarGridSpec(
            num_scalar_prefetch=0,
            grid=(n_m, n_h),
            in_specs=[
                pl.BlockSpec((tm, D), lambda i, h: (i, 0)),         # x (resident over h)
                pl.BlockSpec((D, c1 * th), lambda i, h: (0, h)),    # W1 tile
                pl.BlockSpec((1, c1 * th), lambda i, h: (0, h)),    # b1 tile
                pl.BlockSpec((th, Dout), lambda i, h: (h, 0)),      # W2 tile
                pl.BlockSpec((1, Dout), lambda i, h: (0, 0)),       # b2
            ],
            out_specs=pl.BlockSpec((tm, Dout), lambda i, h: (i, 0)),
            scratch_shapes=[pltpu.VMEM((tm, Dout), jnp.float32)],   # f32 accumulator
        ),
        compiler_params=pltpu.CompilerParams(
            dimension_semantics=("parallel", "arbitrary")),
        cost_estimate=pl.CostEstimate(
            flops=flops, transcendentals=transcendentals,
            bytes_accessed=bytes_accessed),
    )(x2, w1p, b1p, w2T, b2r)

    return out.reshape(tuple(lead) + (Dout,))


def reference(x, params, glu=False):
    """Plain-JAX mirror of the PyTorch forward (exact erf GELU, Dropout(0)=id)."""
    w1 = params["w1"]; b1 = params["b1"]; w2 = params["w2"]; b2 = params["b2"]
    h = x.astype(jnp.float32) @ w1.T + b1
    if glu:
        inner = h.shape[-1] // 2
        h = h[..., :inner] * jax.nn.gelu(h[..., inner:], approximate=False)
    else:
        h = jax.nn.gelu(h, approximate=False)
    # nn.Dropout(p=0.0) is identity.
    return h @ w2.T + b2


def make_params(dim, inner, dim_out, glu, seed=1):
    keys = jax.random.split(jax.random.PRNGKey(seed), 4)
    out1 = 2 * inner if glu else inner
    s1 = 1.0 / math.sqrt(dim)
    s2 = 1.0 / math.sqrt(inner)
    return {
        "w1": s1 * jax.random.normal(keys[0], (out1, dim), jnp.float32),
        "b1": s1 * jax.random.normal(keys[1], (out1,), jnp.float32),
        "w2": s2 * jax.random.normal(keys[2], (dim_out, inner), jnp.float32),
        "b2": s2 * jax.random.normal(keys[3], (dim_out,), jnp.float32),
    }


if __name__ == "__main__":
    # Small but lane-dense shapes: dim / dim_out multiples of 128 (per review:
    # sub-128 channel counts force masked partial stores and are not the real
    # LDM regime). mult=4 as in the module default.
    B, N, D = 2, 256, 128
    mult = 4
    inner = D * mult

    x = jax.random.normal(jax.random.PRNGKey(0), (B, N, D), jnp.float32)

    for glu in (False, True):
        params = make_params(D, inner, D, glu=glu, seed=1)
        out = feed_forward(x, params, glu=glu, tile_m=256, tile_h=256)
        out = jax.block_until_ready(out)
        ref = reference(x, params, glu=glu)
        assert out.shape == ref.shape == (B, N, D)
        max_diff = jnp.max(jnp.abs(out - ref))
        # bf16 MXU operands + tanh-GELU vs exact-erf reference -> relaxed tol.
        assert jnp.allclose(out, ref, rtol=2e-2, atol=2e-2), (
            f"glu={glu}: max abs diff = {max_diff}")

    print("KERNEL_OK")
</pallas_src>

<mosaic_0001>
module attributes {stable_mosaic.version = 11 : i64} {
  func.func @_ff_kernel(%arg0: i32, %arg1: i32, %arg2: memref<256x128xf32, #tpu.memory_space<vmem>>, %arg3: memref<128x256xbf16, #tpu.memory_space<vmem>>, %arg4: memref<1x256xf32, #tpu.memory_space<vmem>>, %arg5: memref<256x128xbf16, #tpu.memory_space<vmem>>, %arg6: memref<1x128xf32, #tpu.memory_space<vmem>>, %arg7: memref<256x128xf32, #tpu.memory_space<vmem>>, %arg8: memref<256x128xf32, #tpu.memory_space<vmem>>) attributes {dimension_semantics = [#tpu.dimension_semantics<parallel>, #tpu.dimension_semantics<arbitrary>], iteration_bounds = array<i64: 2, 2>, scalar_prefetch = 0 : i64, scratch_operands = 1 : i64, tpu.core_type = #tpu.core_type<tc>, window_params = [{transform_indices = @transform_0, window_bounds = array<i64: 256, 128>}, {transform_indices = @transform_1, window_bounds = array<i64: 128, 256>}, {transform_indices = @transform_2, window_bounds = array<i64: 1, 256>}, {transform_indices = @transform_3, window_bounds = array<i64: 256, 128>}, {pipeline_mode = #tpu.pipeline_mode<synchronous>, transform_indices = @transform_4, window_bounds = array<i64: 1, 128>}, {transform_indices = @transform_5, window_bounds = array<i64: 256, 128>}]} {
    %c0_i32 = arith.constant 0 : i32
    %0 = arith.cmpi eq, %arg1, %c0_i32 : i32
    %1 = arith.extui %0 : i1 to i32
    %c0_i32_0 = arith.constant 0 : i32
    %2 = arith.cmpi ne, %1, %c0_i32_0 : i32
    scf.if %2 {
      %cst_18 = arith.constant 0.000000e+00 : f32
      %32 = vector.broadcast %cst_18 : f32 to vector<256x128xf32>
      %c0_19 = arith.constant 0 : index
      %c0_20 = arith.constant 0 : index
      %33 = vector.load %arg8[%c0_19, %c0_20] : memref<256x128xf32, #tpu.memory_space<vmem>>, vector<256x128xf32>
      tpu.vector_store %arg8[%c0_19, %c0_20], %32 {strides = array<i32>} : memref<256x128xf32, #tpu.memory_space<vmem>>, vector<256x128xf32>,
    } else {
    }
    %c0 = arith.constant 0 : index
    %c0_1 = arith.constant 0 : index
    %3 = vector.load %arg2[%c0, %c0_1] : memref<256x128xf32, #tpu.memory_space<vmem>>, vector<256x128xf32>
    %4 = arith.truncf %3 : vector<256x128xf32> to vector<256x128xbf16>
    %c0_2 = arith.constant 0 : index
    %c0_3 = arith.constant 0 : index
    %5 = vector.load %arg3[%c0_2, %c0_3] : memref<128x256xbf16, #tpu.memory_space<vmem>>, vector<128x256xbf16>
    %cst = arith.constant dense<0.000000e+00> : vector<256x256xf32>
    %6 = tpu.matmul %4, %5, %cst {dimension_numbers = #tpu.dot_dimension_numbers<[1], [0], [0], [1], [0, 0, 1, 1], [], []>} : vector<256x128xbf16>, vector<128x256xbf16>, vector<256x256xf32> -> vector<256x256xf32>
    %c0_4 = arith.constant 0 : index
    %c0_5 = arith.constant 0 : index
    %7 = vector.load %arg4[%c0_4, %c0_5] : memref<1x256xf32, #tpu.memory_space<vmem>>, vector<1x256xf32>
    %8 = vector.broadcast %7 : vector<1x256xf32> to vector<256x256xf32>
    %9 = arith.addf %6, %8 : vector<256x256xf32>
    %cst_6 = arith.constant 5.000000e-01 : f32
    %10 = vector.broadcast %cst_6 : f32 to vector<256x256xf32>
    %11 = arith.mulf %10, %9 : vector<256x256xf32>
    %cst_7 = arith.constant 4.471500e-02 : f32
    %12 = vector.broadcast %cst_7 : f32 to vector<256x256xf32>
    %13 = arith.mulf %12, %9 : vector<256x256xf32>
    %14 = arith.mulf %13, %9 : vector<256x256xf32>
    %15 = arith.mulf %14, %9 : vector<256x256xf32>
    %16 = arith.addf %9, %15 : vector<256x256xf32>
    %cst_8 = arith.constant 0.797884583 : f32
    %17 = vector.broadcast %cst_8 : f32 to vector<256x256xf32>
    %18 = arith.mulf %17, %16 : vector<256x256xf32>
    %19 = math.tanh %18 : vector<256x256xf32>
    %cst_9 = arith.constant 1.000000e+00 : f32
    %20 = vector.broadcast %cst_9 : f32 to vector<256x256xf32>
    %21 = arith.addf %20, %19 : vector<256x256xf32>
    %22 = arith.mulf %11, %21 : vector<256x256xf32>
    %c0_10 = arith.constant 0 : index
    %c0_11 = arith.constant 0 : index
    %23 = vector.load %arg8[%c0_10, %c0_11] : memref<256x128xf32, #tpu.memory_space<vmem>>, vector<256x128xf32>
    %24 = arith.truncf %22 : vector<256x256xf32> to vector<256x256xbf16>
    %c0_12 = arith.constant 0 : index
    %c0_13 = arith.constant 0 : index
    %25 = vector.load %arg5[%c0_12, %c0_13] : memref<256x128xbf16, #tpu.memory_space<vmem>>, vector<256x128xbf16>
    %cst_14 = arith.constant dense<0.000000e+00> : vector<256x128xf32>
    %26 = tpu.matmul %24, %25, %cst_14 {dimension_numbers = #tpu.dot_dimension_numbers<[1], [0], [0], [1], [0, 0, 1, 1], [], []>} : vector<256x256xbf16>, vector<256x128xbf16>, vector<256x128xf32> -> vector<256x128xf32>
    %27 = arith.addf %23, %26 : vector<256x128xf32>
    %c0_15 = arith.constant 0 : index
    %c0_16 = arith.constant 0 : index
    %28 = vector.load %arg8[%c0_15, %c0_16] : memref<256x128xf32, #tpu.memory_space<vmem>>, vector<256x128xf32>
    tpu.vector_store %arg8[%c0_15, %c0_16], %27 {strides = array<i32>} : memref<256x128xf32, #tpu.memory_space<vmem>>, vector<256x128xf32>,
    %c1_i32 = arith.constant 1 : i32
    %29 = arith.cmpi eq, %arg1, %c1_i32 : i32
    %30 = arith.extui %29 : i1 to i32
    %c0_i32_17 = arith.constant 0 : i32
    %31 = arith.cmpi ne, %30, %c0_i32_17 : i32
    scf.if %31 {
      %c0_18 = arith.constant 0 : index
      %c0_19 = arith.constant 0 : index
      %32 = vector.load %arg8[%c0_18, %c0_19] : memref<256x128xf32, #tpu.memory_space<vmem>>, vector<256x128xf32>
      %c0_20 = arith.constant 0 : index
      %c0_21 = arith.constant 0 : index
      %33 = vector.load %arg6[%c0_20, %c0_21] : memref<1x128xf32, #tpu.memory_space<vmem>>, vector<1x128xf32>
      %34 = vector.broadcast %33 : vector<1x128xf32> to vector<256x128xf32>
      %35 = arith.addf %32, %34 : vector<256x128xf32>
      %c0_22 = arith.constant 0 : index
      %c0_23 = arith.constant 0 : index
      %36 = vector.load %arg7[%c0_22, %c0_23] : memref<256x128xf32, #tpu.memory_space<vmem>>, vector<256x128xf32>
      tpu.vector_store %arg7[%c0_22, %c0_23], %35 {strides = array<i32>} : memref<256x128xf32, #tpu.memory_space<vmem>>, vector<256x128xf32>,
    } else {
    }
    return
  }
  func.func @transform_0(%arg0: i32, %arg1: i32) -> (i32, i32) {
    %c0_i32 = arith.constant 0 : i32
    %c0_i32_0 = arith.constant 0 : i32
    return %arg0, %c0_i32 : i32, i32
  }
  func.func @transform_1(%arg0: i32, %arg1: i32) -> (i32, i32) {
    %c0_i32 = arith.constant 0 : i32
    %c0_i32_0 = arith.constant 0 : i32
    return %c0_i32, %arg1 : i32, i32
  }
  func.func @transform_2(%arg0: i32, %arg1: i32) -> (i32, i32) {
    %c0_i32 = arith.constant 0 : i32
    %c0_i32_0 = arith.constant 0 : i32
    return %c0_i32, %arg1 : i32, i32
  }
  func.func @transform_3(%arg0: i32, %arg1: i32) -> (i32, i32) {
    %c0_i32 = arith.constant 0 : i32
    %c0_i32_0 = arith.constant 0 : i32
    return %arg1, %c0_i32 : i32, i32
  }
  func.func @transform_4(%arg0: i32, %arg1: i32) -> (i32, i32) {
    %c0_i32 = arith.constant 0 : i32
    %c0_i32_0 = arith.constant 0 : i32
    %c0_i32_1 = arith.constant 0 : i32
    return %c0_i32, %c0_i32_0 : i32, i32
  }
  func.func @transform_5(%arg0: i32, %arg1: i32) -> (i32, i32) {
    %c0_i32 = arith.constant 0 : i32
    %c0_i32_0 = arith.constant 0 : i32
    return %arg0, %c0_i32 : i32, i32
  }
}

</mosaic_0001>

<bundles_post_ra>
// kernel: tpu_custom_call.1
= control target key start
LH: loop header
LB: loop body
LE: loop exit
PB: predicated region body
PF: predicated region fallthrough
CT: control target
= control target key end

     0   :  { %s3917_s0 = inlined_call_operand.hbm [shape: f32[512,128], index: 0, kind: input, shape index: {}]   ;;  %s3918_s1 = inlined_call_operand.hbm [shape: bf16[128,512], index: 1, kind: input, shape index: {}]   ;;  %s3919_s2 = inlined_call_operand.vmem [shape: f32[1,512], index: 2, kind: input, shape index: {}]   ;;  %s3920_s3 = inlined_call_operand.hbm [shape: bf16[512,128], index: 3, kind: input, shape index: {}]   ;;  %s3921_s4 = inlined_call_operand.vmem [shape: f32[1,128], index: 4, kind: input, shape index: {}]   ;;  %s3922_s5 = inlined_call_operand.hbm [shape: f32[512,128], index: 5, kind: output, shape index: {}]  }
   0x1   :  { %3937 = sst [smem:[#allocation21_spill]] %s3918_s1 }
   0x2   :  { %3938 = sst [smem:[#allocation22_spill]] %s3921_s4 }
   0x3   :  { %3939 = sst [smem:[#allocation23_spill]] %s3922_s5 }
   0x4   :  { %10 = vsyncpa [#allocation4], 0 }
   0x5   :  { %12 = vsyncpa [#allocation4 + $0x1], 0 }
   0x6   :  { %13 = vsyncpa [#allocation7], 0 }
   0x7   :  { %15 = vsyncpa [#allocation7 + $0x1], 0 }
   0x8   :  { %16 = vsyncpa [#allocation5], 0 }
   0x9   :  { %18 = vsyncpa [#allocation5 + $0x1], 0  ;;  %s2716_s18 = smov 0   ;;  %s2718_s19 = smov 0  }
   0xa   :  { %s2720_s20 = smov 0   ;;  %s2722_s21 = smov 0  }
   0xb   :  { %s2724_s22 = smov 0   ;;  %s2726_s23 = smov 0  }
   0xc   :  { %s2728_s24 = smov 0   ;;  %s2730_s25 = smov 0  }
   0xd   :  { %s2732_s26 = smov 0   ;;  %s2734_s27 = smov 0  }
   0xe   :  { %s2736_s28 = smov 0  }
   0xf LB: > { %3940 = sst [smem:[#allocation13_spill]] %s2639_s20  ;;  %s33_s29 = sadd.s32 1, %s2663_s26  ;;  %s2671_s28 = sphi %s2736_s28, %s24_s28   ;;  %s2667_s27 = sphi %s2734_s27, %s3980_s27   ;;  %s2663_s26 = sphi %s2732_s26, %s3986_s26   ;;  %s2659_s25 = sphi %s2730_s25, %s3978_s25   ;;  %s2655_s24 = sphi %s2728_s24, %s3985_s24   ;;  %s2651_s23 = sphi %s2726_s23, %s3977_s23   ;;  %s2647_s22 = sphi %s2724_s22, %s3984_s22   ;;  %s2643_s21 = sphi %s2722_s21, %s3983_s21   ;;  %s2639_s20 = sphi %s2720_s20, %s3975_s20   ;;  %s2635_s19 = sphi %s2718_s19, %s3982_s19   ;;  %s2631_s18 = sphi %s2716_s18, %s3981_s18  }
  0x10   : > { %3941 = sst [smem:[#allocation14_spill]] %s2651_s23  ;;  %p3925_p0 = scmp.eq.s32.totalorder %s2671_s28, 0 }
  0x11   : > { %3942 = sst [smem:[#allocation15_spill]] %s2659_s25  ;;  %p2773_p1 = scmp.ge.s32.totalorder %s33_s29, 2 }
  0x12   : > { %3943 = sst [smem:[#allocation16_spill]] %s2667_s27  ;;  %s69_s6 = sadd.s32 1, %s2639_s20 }
  0x13   : > { %p76_p2 = scmp.ne.s32.totalorder %s2639_s20, %s2635_s19  ;;  %s3988_s29 = smov (%p2773_p1, %s33_s29), 0 }
  0x14   : > { %3945 = sst [smem:[#allocation17_spill]] %s3988_s29  ;;  %s66_s7 = ssub.s32 %s2663_s26, %s3988_s29 }
  0x15   : > { %p78_p4 = por %p76_p2, %p3925_p0  ;;  %p3924_p5 = scmp.lt.s32.totalorder %s2671_s28, 4 }
  0x16   : > { %p67_p6 = scmp.eq.s32.totalorder %s66_s7, 0  ;;  %s229_s8 = sand.u32 1, %s2671_s28  }
  0x17   : > { %s231_s10 = sand.u32 1, %s2639_s20   ;;  %s2051_s12 = sshll.u32 %s2663_s26, 7 }
  0x18   : > { %s2793_s9 = scalar_select %p67_p6, %s2639_s20, %s69_s6  }
  0x19   : > { %s2796_s11 = sshll.u32 %s231_s10, 7  ;;  %s3947_s1 = sld [smem:[#allocation21_spill]] }
  0x1a   : > { %3946 = sst [smem:[#allocation18_spill]] %s2793_s9  ;;  %s233_s16 = scalar_lea.vmem [#allocation6], %s2796_s11 }
  0x1b   : > { %s240_s17 = sshll.u32 %s233_s16, 4  ;;  %p2807_p7 = pnand %p3924_p5, %p78_p4  ;;  %s2811_s17 = int_to_ptr.vmem [resolvable:$true] %s240_s17 }
  0x1c   : > { %s2814_s7 = scalar_lea.sflag [#allocation7], %s229_s8 }
  0x1d   : > { %p3927_p10 = pneg %p2807_p7 }
  0x1f   : > { %s2802_s15 = scalar_lea.hbm %s3947_s1, %s2051_s12  ;;  %s2460_s14 = scalar_lea.hbm %s3947_s1, 4096 }
  0x20   : > { %s2455_s10 = scalar_lea.hbm %s2802_s15, 2048  ;;  %p2461_p13 = scmp.lt.u32.totalorder %s2802_s15, %s3947_s1 }
  0x21   : > { %p2456_p9 = scmp.ne.s32.totalorder %s2802_s15, %s2455_s10  ;;  %p2462_p2 = scmp.lt.u32.totalorder %s2460_s14, %s2455_s10 }
  0x22   : > { %p2464_p6 = scmp.lt.u32.totalorder %s2455_s10, %s2802_s15 }
  0x23   : > { %p2458_p11 = pnand %p3927_p10, %p2456_p9  ;;  %p2463_p4 = por %p2462_p2, %p2461_p13 }
  0x25   : > { %p2459_p12 = pneg %p2458_p11  ;;  %p2465_p5 = por %p2464_p6, %p2463_p4 }
  0x27   : > { %p2466_p3 = pnand %p2465_p5, %p2459_p12 }
  0x29   : > { %2469 = shalt.err (!%p2466_p3)
}
  0x2a   : > { %s2470_s8 = scalar_lea.vmem %s2811_s17, 2048  ;;  %s2673_s12 = smov [#allocation6]  }
  0x2b   : > { %p2471_p9 = scmp.ne.s32.totalorder %s2811_s17, %s2470_s8  ;;  %s2475_s13 = sshll.u32 %s2673_s12, 4  ;;  %s2476_s13 = int_to_ptr.vmem [resolvable:$false] %s2475_s13 }
  0x2c   : > { %s2477_s29 = scalar_lea.vmem %s2476_s13, 4096  ;;  %p2478_p8 = scmp.lt.s32.totalorder %s2811_s17, %s2476_s13 }
  0x2d   : > { %p2473_p11 = pnand %p2471_p9, %p3927_p10  ;;  %p2479_p13 = scmp.lt.s32.totalorder %s2477_s29, %s2470_s8 }
  0x2f   : > { %p2474_p0 = pneg %p2473_p11  ;;  %p2480_p2 = por %p2479_p13, %p2478_p8 }
  0x31   : > { %p2481_p4 = pnand %p2480_p2, %p2474_p0 }
  0x33   : > { %2484 = shalt.err (!%p2481_p4)
}
  0x34   : > { %s2674_s10 = smov 256   ;;  %s3926_s14 = smov 128  }
  0x35   : > { %s3928_s16 = smov 8   ;;  %p277_p0 = scmp.lt.s32.totalorder %s2671_s28, 5 }
  0x36   : > { %2180 = dma.hbm_to_vmem [thread:$0]  (!%p2807_p7), %s2802_s15, 2048, %s2811_s17, %s2814_s7, %s2674_s10, %s3926_s14, %s3928_s16  }
  0x37   : > { %p3949_p3 = scmp.ge.s32.totalorder %s2671_s28, 1  ;;  %s2852_s12 = sadd.s32 4294967295, %s2671_s28  }
  0x38   : > { %s1992_s13 = sadd.s32 4294967294, %s2671_s28   ;;  %s36_s29 = sadd.s32 1, %s2667_s27 }
  0x39   : > { %p2847_p5 = pnand %p3949_p3, %p277_p0  ;;  %s43_s1 = sadd.s32 1, %s2651_s23 }
  0x3a   : > { %s3990_s29 = smov (!%p2773_p1, %s36_s29), %s2667_s27  ;;  %p50_p8 = scmp.ne.s32.totalorder %s2651_s23, %s2647_s22 }
  0x3b   : > { %s3950_s8 = scalar_select %p2847_p5, 1, 0 }
  0x3c   : > { %p56_p12 = scmp.ne.s32.totalorder %s2647_s22, %s2643_s21  ;;  %p38_p6 = scmp.ge.s32.totalorder %s3990_s29, 2 }
  0x3d   : > { %p57_p9 = scmp.eq.s32.totalorder %s2852_s12, 0  ;;  %p3951_p11 = scmp.eq.s32.totalorder %s2671_s28, 0 }
  0x3e   : > { %p179_p2 = scmp.eq.s32.totalorder %s2852_s12, 3  ;;  %s3992_s29 = smov (%p38_p6, %s3990_s29), 0 }
  0x3f   : > { %p2867_p13 = por %p3951_p11, %p50_p8  ;;  %3953 = sst [smem:[#allocation19_spill]] %s3992_s29 }
  0x40   : > { %p2877_p1 = por %p57_p9, %p56_p12  ;;  %p3955_p4 = scmp.ne.s32.totalorder %s2635_s19, %s2631_s18 }
  0x41   : > { %s40_s10 = ssub.s32 %s2667_s27, %s3992_s29  ;;  %p2890_p3 = por %p179_p2, %p50_p8 }
  0x42   : > { %s3954_s30 = scalar_select %p2877_p1, 1, 0 }
  0x43   : > { %p2884_p0 = por %p3955_p4, %p57_p9  ;;  %p41_p11 = scmp.eq.s32.totalorder %s40_s10, 0 }
  0x44   : > { %s3957_s14 = scalar_select %p2890_p3, 1, 0 }
  0x45   : > { %s3956_s17 = scalar_select %p2884_p0, 1, 0 }
  0x46   : > { %p185_p10 = scmp.eq.s32.totalorder %s1992_s13, 3  ;;  %s208_s16 = sand.u32 1, %s2651_s23  }
  0x47   : > { %s2050_s9 = sshll.u32 %s2667_s27, 12  ;;  %s1995_s18 = sshll.u32 %s208_s16, 8 }
  0x48   : > { %s2897_s20 = scalar_select %p41_p11, %s2651_s23, %s43_s1  }
  0x49   : > { %p2902_p6 = por %p185_p10, %p56_p12  ;;  %s2909_s29 = scalar_lea.hbm %s3917_s0, %s2050_s9 }
  0x4a   : > { %3958 = sst [smem:[#allocation20_spill]] %s2897_s20  ;;  %p3960_p8 = scmp.lt.s32.totalorder %s2671_s28, 4 }
  0x4b   : > { %s3959_s5 = scalar_select %p2902_p6, 1, 0 }
  0x4c   : > { %p2915_p9 = pnand %p3960_p8, %p2867_p13  ;;  %s212_s13 = scalar_lea.vmem [#allocation3], %s1995_s18 }
  0x4d   : > { %s219_s10 = sshll.u32 %s212_s13, 4  ;;  %s2921_s27 = scalar_lea.sflag [#allocation4], %s208_s16  ;;  %s2919_s10 = int_to_ptr.vmem [resolvable:$true] %s219_s10 }
  0x4e   : > { %s2485_s4 = scalar_lea.hbm %s2909_s29, 4096  ;;  %p2487_p12 = pneg %p2915_p9 }
  0x4f   : > { %p2486_p10 = scmp.ne.s32.totalorder %s2909_s29, %s2485_s4  ;;  %s2490_s15 = scalar_lea.hbm %s3917_s0, 8192 }
  0x50   : > { %p2491_p13 = scmp.lt.u32.totalorder %s2909_s29, %s3917_s0  ;;  %p2492_p11 = scmp.lt.u32.totalorder %s2490_s15, %s2485_s4 }
  0x51   : > { %p2488_p2 = pnand %p2487_p12, %p2486_p10  ;;  %p2494_p6 = scmp.lt.u32.totalorder %s2485_s4, %s2909_s29 }
  0x52   : > { %p2493_p8 = por %p2492_p11, %p2491_p13 }
  0x53   : > { %p2489_p4 = pneg %p2488_p2 }
  0x54   : > { %p2495_p3 = por %p2494_p6, %p2493_p8 }
  0x56   : > { %p2496_p0 = pnand %p2495_p3, %p2489_p4 }
  0x58   : > { %2499 = shalt.err (!%p2496_p0)
}
  0x59   : > { %s2500_s16 = scalar_lea.vmem %s2919_s10, 4096  ;;  %s2677_s18 = smov [#allocation3]  }
  0x5a   : > { %p2501_p10 = scmp.ne.s32.totalorder %s2919_s10, %s2500_s16  ;;  %s2505_s13 = sshll.u32 %s2677_s18, 4  ;;  %s2506_s13 = int_to_ptr.vmem [resolvable:$false] %s2505_s13 }
  0x5b   : > { %s2507_s20 = scalar_lea.vmem %s2506_s13, 8192  ;;  %p2508_p5 = scmp.lt.s32.totalorder %s2919_s10, %s2506_s13 }
  0x5c   : > { %p2503_p2 = pnand %p2501_p10, %p2487_p12  ;;  %p2509_p13 = scmp.lt.s32.totalorder %s2507_s20, %s2500_s16 }
  0x5e   : > { %p2504_p1 = pneg %p2503_p2  ;;  %p2510_p11 = por %p2509_p13, %p2508_p5 }
  0x60   : > { %p2511_p6 = pnand %p2510_p11, %p2504_p1 }
  0x62   : > { %2514 = shalt.err (!%p2511_p6)
}
  0x63   : > { %s3962_s23 = smov 8   ;;  %s3963_s4 = smov 128  }
  0x64   : > { %2177 = dma.hbm_to_vmem [thread:$0]  (!%p2915_p9), %s2909_s29, 4096, %s2919_s10, %s2921_s27, %s3963_s4, %s3963_s4, %s3962_s23  }
  0x65   : > { %s2052_s25 = sshll.u32 %s2663_s26, 11  ;;  %s262_s9 = scalar_lea.vmem [#allocation8], %s2796_s11 }
  0x66   : > { %s269_s15 = sshll.u32 %s262_s9, 4  ;;  %s2957_s13 = scalar_lea.hbm %s3920_s3, %s2052_s25  ;;  %s2959_s15 = int_to_ptr.vmem [resolvable:$true] %s269_s15 }
  0x67   : > { %s2515_s1 = scalar_lea.hbm %s2957_s13, 2048  ;;  %p3964_p1 = pneg %p2807_p7 }
  0x68   : > { %p2516_p5 = scmp.ne.s32.totalorder %s2957_s13, %s2515_s1  ;;  %s2520_s29 = scalar_lea.hbm %s3920_s3, 4096 }
  0x69   : > { %p2521_p9 = scmp.lt.u32.totalorder %s2957_s13, %s3920_s3  ;;  %p2522_p12 = scmp.lt.u32.totalorder %s2520_s29, %s2515_s1 }
  0x6a   : > { %p2518_p0 = pnand %p2516_p5, %p3964_p1  ;;  %p2524_p8 = scmp.lt.u32.totalorder %s2515_s1, %s2957_s13 }
  0x6b   : > { %p2523_p4 = por %p2522_p12, %p2521_p9 }
  0x6c   : > { %p2519_p3 = pneg %p2518_p0 }
  0x6d   : > { %p2525_p10 = por %p2524_p8, %p2523_p4 }
  0x6f   : > { %p2526_p2 = pnand %p2525_p10, %p2519_p3 }
  0x71   : > { %2529 = shalt.err (!%p2526_p2)
}
  0x72   : > { %s2530_s23 = scalar_lea.vmem %s2959_s15, 2048  ;;  %p3965_p11 = pmov %p3964_p1 }
  0x73   : > { %p2531_p13 = scmp.ne.s32.totalorder %s2959_s15, %s2530_s23  ;;  %s2678_s4 = smov [#allocation8]  }
  0x74   : > { %s2535_s25 = sshll.u32 %s2678_s4, 4  ;;  %s2536_s25 = int_to_ptr.vmem [resolvable:$false] %s2535_s25 }
  0x75   : > { %p2533_p6 = pnand %p2531_p13, %p3965_p11  ;;  %s2537_s9 = scalar_lea.vmem %s2536_s25, 4096 }
  0x76   : > { %p2538_p1 = scmp.lt.s32.totalorder %s2959_s15, %s2536_s25  ;;  %p2539_p0 = scmp.lt.s32.totalorder %s2537_s9, %s2530_s23 }
  0x77   : > { %p2534_p5 = pneg %p2533_p6 }
  0x78   : > { %p2540_p9 = por %p2539_p0, %p2538_p1 }
  0x7a   : > { %p2541_p12 = pnand %p2540_p9, %p2534_p5 }
  0x7c   : > { %2544 = shalt.err (!%p2541_p12)
}
  0x7d   : > { %s2679_s18 = smov 64   ;;  %s2680_s16 = smov 4  }
  0x7e   : > { %2183 = dma.hbm_to_vmem [thread:$0]  (!%p2807_p7), %s2957_s13, 2048, %s2959_s15, %s2814_s7, %s2679_s18, %s2679_s18, %s2680_s16  }
  0x7f   : > { %p3966_p3 = scmp.ne.s32.totalorder %s3950_s8, 0 }
  0x80   : > { %s2988_s1 = sand.u32 (!%p3966_p3), 1, %s2647_s22   ;;  %p3967_p4 = scmp.ne.s32.totalorder (!%p3966_p3), %s3954_s30, 0 }
  0x81   : > { %281 = sbr.rel (%p3966_p3) target bundleno = 854 (0x356), region = 40  ;;  %s2005_s27 = sshll.u32 (!%p3966_p3), %s2988_s1, 8 }
  0x82   : > { %s284_s11 = scalar_lea.sflag (!%p3966_p3), [#allocation4], %s2988_s1  ;;  %s2992_s29 = scalar_lea.vmem (!%p3966_p3), [#allocation3], %s2005_s27 }
  0x88   : > { %2618 = dma.done.wait (%p3967_p4), %s284_s11, 4096  }
  0x89   : > { %2620 = vsyncadd (%p3967_p4), %s284_s11, 4294963200  ;;  %s292_s6 = sand.u32 1, %s2852_s12   ;;  %s294_s7 = sand.u32 1, %s2635_s19  }
  0x8a   : > { %s2006_s8 = sshll.u32 %s294_s7, 7  ;;  %s293_s15 = scalar_lea.sflag [#allocation7], %s292_s6 }
  0x8b   : > { %s3000_s13 = scalar_lea.vmem [#allocation6], %s2006_s8  ;;  %p3968_p7 = scmp.ne.s32.totalorder %s3956_s17, 0 }
  0x8d   : > { %2622 = dma.done.wait (%p3968_p7), %s293_s15, 4096  }
  0x8e   : > { %2624 = vsyncadd (%p3968_p7), %s293_s15, 4294963200  ;;  %s2009_s10 = sshll.u32 %s2655_s24, 1  ;;  %s3013_s23 = scalar_lea.vmem [#allocation8], %s2006_s8 }
  0x8f   : > { %p349_p8 = scmp.lt.s32.totalorder %s2009_s10, 3  ;;  %s3015_s4 = scalar_lea.vmem [#allocation9], %s2005_s27 }
  0x90   : > { %p2010_p10 = scmp.ne.s32.totalorder %s2655_s24, 0 }
  0x91   : > { %s3994_s10 = smov (!%p349_p8, %s2009_s10), 3  ;;  %v2681_v0 = vmov (!%p2010_p10), 0.0  }
  0x92   : > { %s351_s12 = scalar_lea.vmem %s3919_s2, %s3994_s10  ;;  %359 = sbr.rel (%p2010_p10) target bundleno = 162 (0xa2), region = 56  ;;  %360 = vst [vmem:[#allocation2] sm:$0xff] (!%p2010_p10), %v2681_v0  ;;  %361 = vst [vmem:[#allocation2 + $0x8] sm:$0xff] (!%p2010_p10), %v2681_v0 }
  0x93   : > { %362 = vst [vmem:[#allocation2 + $0x10] sm:$0xff] (!%p2010_p10), %v2681_v0  ;;  %363 = vst [vmem:[#allocation2 + $0x18] sm:$0xff] (!%p2010_p10), %v2681_v0 }
  0x94   : > { %364 = vst [vmem:[#allocation2 + $0x20] sm:$0xff] (!%p2010_p10), %v2681_v0  ;;  %365 = vst [vmem:[#allocation2 + $0x28] sm:$0xff] (!%p2010_p10), %v2681_v0 }
  0x95   : > { %366 = vst [vmem:[#allocation2 + $0x30] sm:$0xff] (!%p2010_p10), %v2681_v0  ;;  %367 = vst [vmem:[#allocation2 + $0x38] sm:$0xff] (!%p2010_p10), %v2681_v0 }
  0x96   : > { %368 = vst [vmem:[#allocation2 + $0x40] sm:$0xff] (!%p2010_p10), %v2681_v0  ;;  %369 = vst [vmem:[#allocation2 + $0x48] sm:$0xff] (!%p2010_p10), %v2681_v0 }
  0x97   : > { %370 = vst [vmem:[#allocation2 + $0x50] sm:$0xff] (!%p2010_p10), %v2681_v0  ;;  %371 = vst [vmem:[#allocation2 + $0x58] sm:$0xff] (!%p2010_p10), %v2681_v0 }
  0x98   : > { %372 = vst [vmem:[#allocation2 + $0x60] sm:$0xff] (!%p2010_p10), %v2681_v0  ;;  %373 = vst [vmem:[#allocation2 + $0x68] sm:$0xff] (!%p2010_p10), %v2681_v0 }
  0x99   : > { %374 = vst [vmem:[#allocation2 + $0x70] sm:$0xff] %v2681_v0  ;;  %375 = vst [vmem:[#allocation2 + $0x78] sm:$0xff] %v2681_v0 }
  0x9a   : > { %376 = vst [vmem:[#allocation2 + $0x80] sm:$0xff] %v2681_v0  ;;  %377 = vst [vmem:[#allocation2 + $0x88] sm:$0xff] %v2681_v0 }
  0x9b   : > { %378 = vst [vmem:[#allocation2 + $0x90] sm:$0xff] %v2681_v0  ;;  %379 = vst [vmem:[#allocation2 + $0x98] sm:$0xff] %v2681_v0 }
  0x9c   : > { %380 = vst [vmem:[#allocation2 + $0xa0] sm:$0xff] %v2681_v0  ;;  %381 = vst [vmem:[#allocation2 + $0xa8] sm:$0xff] %v2681_v0 }
  0x9d   : > { %382 = vst [vmem:[#allocation2 + $0xb0] sm:$0xff] %v2681_v0  ;;  %383 = vst [vmem:[#allocation2 + $0xb8] sm:$0xff] %v2681_v0 }
  0x9e   : > { %384 = vst [vmem:[#allocation2 + $0xc0] sm:$0xff] %v2681_v0  ;;  %385 = vst [vmem:[#allocation2 + $0xc8] sm:$0xff] %v2681_v0 }
  0x9f   : > { %386 = vst [vmem:[#allocation2 + $0xd0] sm:$0xff] %v2681_v0  ;;  %387 = vst [vmem:[#allocation2 + $0xd8] sm:$0xff] %v2681_v0 }
  0xa0   : > { %388 = vst [vmem:[#allocation2 + $0xe0] sm:$0xff] %v2681_v0  ;;  %389 = vst [vmem:[#allocation2 + $0xe8] sm:$0xff] %v2681_v0 }
  0xa1   : > { %390 = vst [vmem:[#allocation2 + $0xf0] sm:$0xff] %v2681_v0  ;;  %391 = vst [vmem:[#allocation2 + $0xf8] sm:$0xff] %v2681_v0 }
  0xa2 PF: > { %v2287_v1 = vld [vmem:[%s3000_s13 + $0x4] ss:$8 sps:$4 sm:$0xff]   ;;  %v2289_v2 = vld [vmem:[%s3000_s13] ss:$8 sps:$4 sm:$0xff]   ;;  %v2682_v3 = vmov 0   ;;  %v394_v21 = vld [vmem:[%s2992_s29 + $0x10] sm:$0xff] }
  0xa3   : > { %580 = vmatprep.mubr.bf16.mxu0 %v2682_v3  ;;  %548 = vmatprep.subr.bf16.mxu0 %v2287_v1  ;;  %v2290_v4 = vld [vmem:[%s3000_s13 + $0x14] ss:$8 sps:$4 sm:$0xff]   ;;  %v2292_v5 = vld [vmem:[%s3000_s13 + $0x10] ss:$8 sps:$4 sm:$0xff]   ;;  %v2293_v6 = vld [vmem:[%s3000_s13 + $0x24] ss:$8 sps:$4 sm:$0xff]  }
  0xa4   : > { %549 = vmatpush1.bf16.msra.mxu0 %v2289_v2  ;;  %v2295_v7 = vld [vmem:[%s3000_s13 + $0x20] ss:$8 sps:$4 sm:$0xff]   ;;  %v2296_v8 = vld [vmem:[%s3000_s13 + $0x34] ss:$8 sps:$4 sm:$0xff]   ;;  %v2298_v9 = vld [vmem:[%s3000_s13 + $0x30] ss:$8 sps:$4 sm:$0xff]  }
  0xa5   : > { %550 = vmatprep.subr.bf16.mxu0 %v2290_v4  ;;  %v2299_v10 = vld [vmem:[%s3000_s13 + $0x44] ss:$8 sps:$4 sm:$0xff]   ;;  %v2301_v11 = vld [vmem:[%s3000_s13 + $0x40] ss:$8 sps:$4 sm:$0xff]   ;;  %v2302_v12 = vld [vmem:[%s3000_s13 + $0x54] ss:$8 sps:$4 sm:$0xff]  }
  0xa6   : > { %v2304_v13 = vld [vmem:[%s3000_s13 + $0x50] ss:$8 sps:$4 sm:$0xff]   ;;  %v2305_v14 = vld [vmem:[%s3000_s13 + $0x64] ss:$8 sps:$4 sm:$0xff]   ;;  %v2307_v15 = vld [vmem:[%s3000_s13 + $0x60] ss:$8 sps:$4 sm:$0xff]  }
  0xa7   : > { %v2308_v16 = vld [vmem:[%s3000_s13 + $0x74] ss:$8 sps:$4 sm:$0xff]   ;;  %v2310_v17 = vld [vmem:[%s3000_s13 + $0x70] ss:$8 sps:$4 sm:$0xff]   ;;  %v392_v18 = vld [vmem:[%s2992_s29] sm:$0xff]  ;;  %p2043_p2 = scmp.ne.s32.totalorder %s2655_s24, 1 }
  0xa8   : > { %551 = vmatpush1.bf16.msra.mxu0 %v2292_v5  ;;  %v393_v19 = vld [vmem:[%s2992_s29 + $0x8] sm:$0xff]  ;;  %v395_v22 = vld [vmem:[%s2992_s29 + $0x18] sm:$0xff]  ;;  %v396_v24 = vld [vmem:[%s2992_s29 + $0x20] sm:$0xff]  ;;  %s3969_s16 = sld [smem:[#allocation22_spill]] (!%p2043_p2) }
  0xa9   : > { %552 = vmatprep.subr.bf16.mxu0 %v2293_v6  ;;  %v424_v20 = vpack.c.bf16 %v393_v19, %v392_v18  ;;  %v425_v23 = vpack.c.bf16 %v395_v22, %v394_v21  ;;  %v397_v25 = vld [vmem:[%s2992_s29 + $0x28] sm:$0xff]  ;;  %v398_v27 = vld [vmem:[%s2992_s29 + $0x30] sm:$0xff]  ;;  %v399_v28 = vld [vmem:[%s2992_s29 + $0x38] sm:$0xff]  ;;  %v458_v19 = vlaneseq }
  0xaa   : > { %v426_v26 = vpack.c.bf16 %v397_v25, %v396_v24  ;;  %v427_v29 = vpack.c.bf16 %v399_v28, %v398_v27  ;;  %v400_v30 = vld [vmem:[%s2992_s29 + $0x40] sm:$0xff]  ;;  %v401_v31 = vld [vmem:[%s2992_s29 + $0x48] sm:$0xff]  ;;  %v402_v33 = vld [vmem:[%s2992_s29 + $0x50] sm:$0xff] }
  0xab   : > { %v428_v32 = vpack.c.bf16 %v401_v31, %v400_v30  ;;  %v403_v34 = vld [vmem:[%s2992_s29 + $0x58] sm:$0xff]  ;;  %v404_v36 = vld [vmem:[%s2992_s29 + $0x60] sm:$0xff]  ;;  %v405_v37 = vld [vmem:[%s2992_s29 + $0x68] sm:$0xff] }
  0xac   : > { %553 = vmatpush1.bf16.msra.mxu0 %v2295_v7  ;;  %v429_v35 = vpack.c.bf16 %v403_v34, %v402_v33  ;;  %v430_v38 = vpack.c.bf16 %v405_v37, %v404_v36  ;;  %v406_v39 = vld [vmem:[%s2992_s29 + $0x70] sm:$0xff]  ;;  %v407_v40 = vld [vmem:[%s2992_s29 + $0x78] sm:$0xff]  ;;  %v408_v42 = vld [vmem:[%s2992_s29 + $0x80] sm:$0xff] }
  0xad   : > { %554 = vmatprep.subr.bf16.mxu0 %v2296_v8  ;;  %v431_v41 = vpack.c.bf16 %v407_v40, %v406_v39  ;;  %v409_v43 = vld [vmem:[%s2992_s29 + $0x88] sm:$0xff]  ;;  %v410_v45 = vld [vmem:[%s2992_s29 + $0x90] sm:$0xff]  ;;  %v411_v46 = vld [vmem:[%s2992_s29 + $0x98] sm:$0xff] }
  0xae   : > { %v432_v44 = vpack.c.bf16 %v409_v43, %v408_v42  ;;  %v433_v47 = vpack.c.bf16 %v411_v46, %v410_v45  ;;  %v412_v48 = vld [vmem:[%s2992_s29 + $0xa0] sm:$0xff]  ;;  %v413_v49 = vld [vmem:[%s2992_s29 + $0xa8] sm:$0xff]  ;;  %v414_v51 = vld [vmem:[%s2992_s29 + $0xb0] sm:$0xff] }
  0xaf   : > { %v434_v50 = vpack.c.bf16 %v413_v49, %v412_v48  ;;  %v415_v52 = vld [vmem:[%s2992_s29 + $0xb8] sm:$0xff]  ;;  %v2311_v53 = vld [vmem:[%s3013_s23 + $0x40] sm:$0xff]   ;;  %v2313_v56 = vld [vmem:[%s3013_s23 + $0x48] sm:$0xff]  }
  0xb0   : > { %555 = vmatpush1.bf16.msra.mxu0 %v2298_v9  ;;  %v435_v54 = vpack.c.bf16 %v415_v52, %v414_v51  ;;  %v2312_v55 = vld [vmem:[%s3013_s23] sm:$0xff]   ;;  %2054 = vmatprep.subr.bf16.mxu1 %v2311_v53  ;;  %v2314_v57 = vld [vmem:[%s3013_s23 + $0x8] sm:$0xff]   ;;  %v2315_v60 = vld [vmem:[%s3013_s23 + $0x50] sm:$0xff]  }
  0xb1   : > { %556 = vmatprep.subr.bf16.mxu0 %v2299_v10  ;;  %2055 = vmatpush3.bf16.msra.mxu1 %v2312_v55  ;;  %v416_v58 = vld [vmem:[%s2992_s29 + $0xc0] sm:$0xff]  ;;  %v417_v59 = vld [vmem:[%s2992_s29 + $0xc8] sm:$0xff]  ;;  %v2316_v62 = vld [vmem:[%s3013_s23 + $0x10] sm:$0xff]  }
  0xb2   : > { %2056 = vmatprep.subr.bf16.mxu1 %v2313_v56  ;;  %v436_v61 = vpack.c.bf16 %v417_v59, %v416_v58  ;;  %v2317_v63 = vld [vmem:[%s3013_s23 + $0x58] sm:$0xff]   ;;  %v418_v1 = vld [vmem:[%s2992_s29 + $0xd0] sm:$0xff]  ;;  %v2319_v4 = vld [vmem:[%s3013_s23 + $0x60] sm:$0xff]  }
  0xb3   : > { %v2318_v0 = vld [vmem:[%s3013_s23 + $0x18] sm:$0xff]   ;;  %v2320_v6 = vld [vmem:[%s3013_s23 + $0x20] sm:$0xff]   ;;  %v2321_v7 = vld [vmem:[%s3013_s23 + $0x68] sm:$0xff]  }
  0xb4   : > { %557 = vmatpush1.bf16.msra.mxu0 %v2301_v11  ;;  %v419_v2 = vld [vmem:[%s2992_s29 + $0xd8] sm:$0xff]  ;;  %v2322_v8 = vld [vmem:[%s3013_s23 + $0x28] sm:$0xff]   ;;  %v420_v9 = vld [vmem:[%s2992_s29 + $0xe0] sm:$0xff] }
  0xb5   : > { %558 = vmatprep.subr.bf16.mxu0 %v2302_v12  ;;  %2057 = vmatpush3.bf16.msra.mxu1 %v2314_v57  ;;  %v437_v5 = vpack.c.bf16 %v419_v2, %v418_v1  ;;  %v421_v10 = vld [vmem:[%s2992_s29 + $0xe8] sm:$0xff]  ;;  %v2323_v11 = vld [vmem:[%s3013_s23 + $0x70] sm:$0xff]   ;;  %v456_v22 = vld [vmem:[%s351_s12] sm:$0x3] }
  0xb6   : > { %2058 = vmatprep.subr.bf16.mxu1 %v2315_v60  ;;  %v438_v12 = vpack.c.bf16 %v421_v10, %v420_v9 }
  0xb8   : > { %559 = vmatpush1.bf16.msra.mxu0 %v2304_v13  ;;  %v2324_v13 = vld [vmem:[%s3013_s23 + $0x30] sm:$0xff]  }
  0xb9   : > { %560 = vmatprep.subr.bf16.mxu0 %v2305_v14  ;;  %2059 = vmatpush3.bf16.msra.mxu1 %v2316_v62  ;;  %v2325_v14 = vld [vmem:[%s3013_s23 + $0x78] sm:$0xff]  }
  0xba   : > { %2060 = vmatprep.subr.bf16.mxu1 %v2317_v63 }
  0xbc   : > { %561 = vmatpush1.bf16.msra.mxu0 %v2307_v15  ;;  %v2326_v15 = vld [vmem:[%s3013_s23 + $0x38] sm:$0xff]  }
  0xbd   : > { %562 = vmatprep.subr.bf16.mxu0 %v2308_v16  ;;  %2061 = vmatpush3.bf16.msra.mxu1 %v2318_v0  ;;  %v422_v16 = vld [vmem:[%s2992_s29 + $0xf0] sm:$0xff] }
  0xbe   : > { %2062 = vmatprep.subr.bf16.mxu1 %v2319_v4 }
  0xc0   : > { %563 = vmatpush1.bf16.msra.mxu0 %v2310_v17  ;;  %v423_v17 = vld [vmem:[%s2992_s29 + $0xf8] sm:$0xff] }
  0xc1   : > { %2063 = vmatpush3.bf16.msra.mxu1 %v2320_v6  ;;  %v439_v18 = vpack.c.bf16 %v423_v17, %v422_v16 }
  0xc2   : > { %2064 = vmatprep.subr.bf16.mxu1 %v2321_v7 }
  0xc3   : > { %581 = vmatmul.mubr.bf16.vlgmr.msra.gmra.mrb[0].mxu0 %v424_v20  ;;  %v459_v20 = vshrl.u32 %v458_v19, 7 }
  0xc4   : > { %590 = vmatprep.mubr.bf16.mxu0 %v2682_v3 }
  0xc5   : > { %2065 = vmatpush3.bf16.msra.mxu1 %v2322_v8  ;;  %v460_v21 = vsub.s32 0, %v459_v20 }
  0xc6   : > { %2066 = vmatprep.subr.bf16.mxu1 %v2323_v11 }
  0xc7   : > { %v3103_v24 = vrot.slane %v456_v22, %v460_v21 }
  0xc9   : > { %2067 = vmatpush3.bf16.msra.mxu1 %v2324_v13 }
  0xca   : > { %2068 = vmatprep.subr.bf16.mxu1 %v2325_v14 }
  0xcb   : > { %591 = vmatmul.mubr.bf16.gmra.mrb[4].mxu0 %v425_v23  ;;  %v464_v23 = vsub.s32 1, %v459_v20 }
  0xcc   : > { %600 = vmatprep.mubr.bf16.mxu0 %v2682_v3 }
  0xcd   : > { %2069 = vmatpush3.bf16.msra.mxu1 %v2326_v15  ;;  %v3105_v25 = vrot.slane %v456_v22, %v464_v23 }
  0xd3   : > { %601 = vmatmul.mubr.bf16.gmra.mrb[8].mxu0 %v426_v26 }
  0xd4   : > { %610 = vmatprep.mubr.bf16.mxu0 %v2682_v3 }
  0xdb   : > { %611 = vmatmul.mubr.bf16.gmra.mrb[12].mxu0 %v427_v29 }
  0xdc   : > { %620 = vmatprep.mubr.bf16.mxu0 %v2682_v3 }
  0xe3   : > { %621 = vmatmul.mubr.bf16.gmra.mrb[16].mxu0 %v428_v32 }
  0xe4   : > { %630 = vmatprep.mubr.bf16.mxu0 %v2682_v3 }
  0xeb   : > { %631 = vmatmul.mubr.bf16.gmra.mrb[20].mxu0 %v429_v35 }
  0xec   : > { %640 = vmatprep.mubr.bf16.mxu0 %v2682_v3 }
  0xf3   : > { %641 = vmatmul.mubr.bf16.gmra.mrb[24].mxu0 %v430_v38 }
  0xf4   : > { %650 = vmatprep.mubr.bf16.mxu0 %v2682_v3 }
  0xfb   : > { %651 = vmatmul.mubr.bf16.gmra.mrb[28].mxu0 %v431_v41 }
  0xfc   : > { %660 = vmatprep.mubr.bf16.mxu0 %v2682_v3 }
 0x103   : > { %661 = vmatmul.mubr.bf16.gmra.mrb[32].mxu0 %v432_v44 }
 0x104   : > { %670 = vmatprep.mubr.bf16.mxu0 %v2682_v3 }
 0x10b   : > { %671 = vmatmul.mubr.bf16.gmra.mrb[36].mxu0 %v433_v47 }
 0x10c   : > { %680 = vmatprep.mubr.bf16.mxu0 %v2682_v3 }
 0x113   : > { %681 = vmatmul.mubr.bf16.gmra.mrb[40].mxu0 %v434_v50 }
 0x114   : > { %690 = vmatprep.mubr.bf16.mxu0 %v2682_v3 }
 0x11b   : > { %691 = vmatmul.mubr.bf16.gmra.mrb[44].mxu0 %v435_v54 }
 0x11c   : > { %700 = vmatprep.mubr.bf16.mxu0 %v2682_v3 }
 0x123   : > { %701 = vmatmul.mubr.bf16.gmra.mrb[48].mxu0 %v436_v61 }
 0x124   : > { %710 = vmatprep.mubr.bf16.mxu0 %v2682_v3 }
 0x12b   : > { %711 = vmatmul.mubr.bf16.gmra.mrb[52].mxu0 %v437_v5 }
 0x12c   : > { %720 = vmatprep.mubr.bf16.mxu0 %v2682_v3 }
 0x133   : > { %721 = vmatmul.mubr.bf16.gmra.mrb[56].mxu0 %v438_v12 }
 0x134   : > { %730 = vmatprep.mubr.bf16.mxu0 %v2682_v3 }
 0x13b   : > { %731 = vmatmul.mubr.bf16.gmra.mrb[60].mxu0 %v439_v18 }
 0x196   : > { %v582_v3 = vpop.f32.mrb[0].mxu0 }
 0x197   : > { %v583_v26 = vadd.f32 %v582_v3, %v3103_v24  ;;  %v584_v27 = vpop.f32.mrb[1].mxu0 }
 0x198   : > { %v585_v28 = vadd.f32 %v584_v27, %v3105_v25  ;;  %v586_v29 = vpop.f32.mrb[2].mxu0 }
 0x199   : > { %v805_v30 = vmul.f32 0.044715, %v583_v26  ;;  %v3110_v31 = vadd.f32 %v586_v29, %v3103_v24  ;;  %v588_v32 = vpop.f32.mrb[3].mxu0  ;;  %v741_v20 = vmul.f32 0.5, %v583_v26 }
 0x19a   : > { %v806_v33 = vmul.f32 0.044715, %v585_v28  ;;  %v3113_v34 = vadd.f32 %v588_v32, %v3105_v25  ;;  %v742_v19 = vmul.f32 0.5, %v585_v28 }
 0x19b   : > { %v869_v35 = vmul.f32 %v805_v30, %v583_v26  ;;  %v807_v36 = vmul.f32 0.044715, %v3110_v31 }
 0x19c   : > { %v808_v37 = vmul.f32 0.044715, %v3113_v34  ;;  %v870_v38 = vmul.f32 %v806_v33, %v585_v28 }
 0x19d   : > { %v933_v39 = vmul.f32 %v869_v35, %v583_v26  ;;  %v871_v40 = vmul.f32 %v807_v36, %v3110_v31 }
 0x19e   : > { %v592_v41 = vpop.f32.mrb[4].mxu0  ;;  %v872_v42 = vmul.f32 %v808_v37, %v3113_v34  ;;  %v934_v43 = vmul.f32 %v870_v38, %v585_v28  ;;  %v743_v37 = vmul.f32 0.5, %v3110_v31 }
 0x19f   : > { %v935_v44 = vmul.f32 %v871_v40, %v3110_v31  ;;  %v3121_v45 = vadd.f32 %v592_v41, %v3103_v24  ;;  %v594_v46 = vpop.f32.mrb[5].mxu0  ;;  %v997_v47 = vadd.f32 %v933_v39, %v583_v26 }
 0x1a0   : > { %v595_v48 = vadd.f32 %v594_v46, %v3105_v25  ;;  %v596_v49 = vpop.f32.mrb[6].mxu0  ;;  %v936_v50 = vmul.f32 %v872_v42, %v3113_v34  ;;  %v998_v51 = vadd.f32 %v934_v43, %v585_v28  ;;  %v744_v28 = vmul.f32 0.5, %v3113_v34 }
 0x1a1   : > { %v809_v52 = vmul.f32 0.044715, %v3121_v45  ;;  %v3127_v53 = vadd.f32 %v596_v49, %v3103_v24  ;;  %v598_v54 = vpop.f32.mrb[7].mxu0  ;;  %v999_v55 = vadd.f32 %v935_v44, %v3110_v31  ;;  %v1061_v56 = vmul.f32 0.7978846, %v997_v47 }
 0x1a2   : > { %v810_v57 = vmul.f32 0.044715, %v595_v48  ;;  %v599_v58 = vadd.f32 %v598_v54, %v3105_v25  ;;  %v1000_v59 = vadd.f32 %v936_v50, %v3113_v34  ;;  %v1062_v60 = vmul.f32 0.7978846, %v998_v51 }
 0x1a3   : > { %v873_v61 = vmul.f32 %v809_v52, %v3121_v45  ;;  %v811_v62 = vmul.f32 0.044715, %v3127_v53  ;;  %v1063_v63 = vmul.f32 0.7978846, %v999_v55  ;;  %2327 = vtanh.f32 %v1061_v56 }
 0x1a4   : > { %v874_v0 = vmul.f32 %v810_v57, %v595_v48  ;;  %v812_v1 = vmul.f32 0.044715, %v599_v58  ;;  %v1064_v2 = vmul.f32 0.7978846, %v1000_v59  ;;  %2329 = vtanh.f32 %v1062_v60 }
 0x1a5   : > { %v937_v4 = vmul.f32 %v873_v61, %v3121_v45  ;;  %v875_v5 = vmul.f32 %v811_v62, %v3127_v53  ;;  %2331 = vtanh.f32 %v1063_v63  ;;  %v3157_v38 = vmul.f32 0.5, %v595_v48 }
 0x1a6   : > { %v938_v6 = vmul.f32 %v874_v0, %v595_v48  ;;  %v876_v7 = vmul.f32 %v812_v1, %v599_v58  ;;  %v602_v8 = vpop.f32.mrb[8].mxu0  ;;  %2333 = vtanh.f32 %v1064_v2  ;;  %v748_v50 = vmul.f32 0.5, %v599_v58 }
 0x1a7   : > { %v939_v9 = vmul.f32 %v875_v5, %v3127_v53  ;;  %v3138_v10 = vadd.f32 %v602_v8, %v3103_v24  ;;  %v604_v11 = vpop.f32.mrb[9].mxu0  ;;  %v1001_v16 = vadd.f32 %v937_v4, %v3121_v45  ;;  %v745_v59 = vmul.f32 0.5, %v3121_v45 }
 0x1a8   : > { %v940_v12 = vmul.f32 %v876_v7, %v599_v58  ;;  %v3141_v13 = vadd.f32 %v604_v11, %v3105_v25  ;;  %v606_v14 = vpop.f32.mrb[10].mxu0  ;;  %v1002_v15 = vadd.f32 %v938_v6, %v595_v48 }
 0x1a9   : > { %v3145_v17 = vadd.f32 %v606_v14, %v3103_v24  ;;  %v608_v18 = vpop.f32.mrb[11].mxu0  ;;  %v1003_v21 = vadd.f32 %v939_v9, %v3127_v53  ;;  %v813_v29 = vmul.f32 0.044715, %v3138_v10  ;;  %v1065_v30 = vmul.f32 0.7978846, %v1001_v16 }
 0x1aa   : > { %v814_v22 = vmul.f32 0.044715, %v3141_v13  ;;  %v3150_v23 = vadd.f32 %v608_v18, %v3105_v25  ;;  %v1004_v3 = vadd.f32 %v940_v12, %v599_v58  ;;  %v1066_v27 = vmul.f32 0.7978846, %v1002_v15 }
 0x1ab   : > { %v1067_v32 = vmul.f32 0.7978846, %v1003_v21  ;;  %v815_v40 = vmul.f32 0.044715, %v3145_v17  ;;  %v877_v31 = vmul.f32 %v813_v29, %v3138_v10  ;;  %v747_v58 = vmul.f32 0.5, %v3127_v53 }
 0x1ac   : > { %v878_v33 = vmul.f32 %v814_v22, %v3141_v13  ;;  %v816_v35 = vmul.f32 0.044715, %v3150_v23  ;;  %v1068_v36 = vmul.f32 0.7978846, %v1004_v3  ;;  %2335 = vtanh.f32 %v1066_v27 }
 0x1ad   : > { %v2328_v26 = vpop.eup %2327  ;;  %2337 = vtanh.f32 %v1065_v30  ;;  %v879_v60 = vmul.f32 %v815_v40, %v3145_v17  ;;  %v3178_v4 = vmul.f32 0.5, %v3138_v10  ;;  %v941_v5 = vmul.f32 %v877_v31, %v3138_v10 }
 0x1ae   : > { %v2330_v39 = vpop.eup %2329  ;;  %v880_v41 = vmul.f32 %v816_v35, %v3150_v23  ;;  %v612_v42 = vpop.f32.mrb[12].mxu0  ;;  %v1189_v43 = vadd.f32 1.0, %v2328_v26  ;;  %2339 = vtanh.f32 %v1068_v36  ;;  %v942_v46 = vmul.f32 %v878_v33, %v3141_v13 }
 0x1af   : > { %v2332_v44 = vpop.eup %2331  ;;  %v614_v47 = vpop.f32.mrb[13].mxu0  ;;  %v1190_v49 = vadd.f32 1.0, %v2330_v39  ;;  %2341 = vtanh.f32 %v1067_v32  ;;  %v3165_v51 = vadd.f32 %v612_v42, %v3103_v24  ;;  %v943_v14 = vmul.f32 %v879_v60, %v3145_v17 }
 0x1b0   : > { %v2334_v34 = vpop.eup %2333  ;;  %v944_v48 = vmul.f32 %v880_v41, %v3150_v23  ;;  %v616_v52 = vpop.f32.mrb[14].mxu0  ;;  %v1191_v54 = vadd.f32 1.0, %v2332_v44  ;;  %v3168_v55 = vadd.f32 %v614_v47, %v3105_v25  ;;  %v1253_v62 = vmul.f32 %v1189_v43, %v741_v20 }
 0x1b1   : > { %v618_v56 = vpop.f32.mrb[15].mxu0  ;;  %v1192_v57 = vadd.f32 1.0, %v2334_v34  ;;  %v1254_v0 = vmul.f32 %v1190_v49, %v742_v19  ;;  %v1006_v2 = vadd.f32 %v942_v46, %v3141_v13  ;;  %v817_v45 = vmul.f32 0.044715, %v3165_v51 }
 0x1b2   : > { %v3174_v61 = vadd.f32 %v618_v56, %v3105_v25  ;;  %v1255_v63 = vmul.f32 %v1191_v54, %v743_v37  ;;  %v1008_v53 = vadd.f32 %v944_v48, %v3150_v23  ;;  %v818_v7 = vmul.f32 0.044715, %v3168_v55 }
 0x1b3   : > { %v1256_v1 = vmul.f32 %v1192_v57, %v744_v28  ;;  %v1070_v11 = vmul.f32 0.7978846, %v1006_v2  ;;  %v3187_v15 = vadd.f32 %v616_v52, %v3103_v24  ;;  %v3190_v18 = vmul.f32 0.5, %v3141_v13 }
 0x1b4   : > { %v1349_v6 = vpack.c.bf16 %v1255_v63, %v1253_v62  ;;  %v820_v8 = vmul.f32 0.044715, %v3174_v61  ;;  %v1072_v19 = vmul.f32 0.7978846, %v1008_v53  ;;  %v3196_v27 = vmul.f32 0.5, %v3150_v23 }
 0x1b5   : > { %v1350_v9 = vpack.c.bf16 %v1256_v1, %v1254_v0  ;;  %2343 = vtanh.f32 %v1070_v11  ;;  %v881_v30 = vmul.f32 %v817_v45, %v3165_v51  ;;  %v882_v36 = vmul.f32 %v818_v7, %v3168_v55 }
 0x1b6   : > { %v2336_v12 = vpop.eup %2335  ;;  %v622_v16 = vpop.f32.mrb[16].mxu0  ;;  %2345 = vtanh.f32 %v1072_v19  ;;  %v884_v26 = vmul.f32 %v820_v8, %v3174_v61  ;;  %v819_v39 = vmul.f32 0.044715, %v3187_v15  ;;  %v1005_v47 = vadd.f32 %v941_v5, %v3138_v10 }
 0x1b7   : > { %v2338_v20 = vpop.eup %2337  ;;  %v3193_v21 = vadd.f32 %v622_v16, %v3103_v24  ;;  %v624_v22 = vpop.f32.mrb[17].mxu0  ;;  %1541 = vmatprep.mubr.bf16.mxu1 %v1350_v9  ;;  %v1194_v3 = vadd.f32 1.0, %v2336_v12  ;;  %v1007_v48 = vadd.f32 %v943_v14, %v3145_v17  ;;  %v946_v52 = vmul.f32 %v882_v36, %v3168_v55 }
 0x1b8   : > { %v2340_v29 = vpop.eup %2339  ;;  %v3200_v32 = vadd.f32 %v624_v22, %v3105_v25  ;;  %v626_v13 = vpop.f32.mrb[18].mxu0  ;;  %1542 = vmatmul.mubr.bf16.vlgmr.msra.gmra.mrb[0].mxu1 %v1349_v6  ;;  %v1193_v33 = vadd.f32 1.0, %v2338_v20  ;;  %v948_v54 = vmul.f32 %v884_v26, %v3174_v61  ;;  %v1069_v57 = vmul.f32 0.7978846, %v1005_v47 }
 0x1b9   : > { %v2342_v35 = vpop.eup %2341  ;;  %v3205_v28 = vadd.f32 %v626_v13, %v3103_v24  ;;  %v628_v23 = vpop.f32.mrb[19].mxu0  ;;  %v1196_v37 = vadd.f32 1.0, %v2340_v29  ;;  %v821_v40 = vmul.f32 0.044715, %v3193_v21  ;;  %v1258_v44 = vmul.f32 %v1194_v3, %v3157_v38 }
 0x1ba   : > { %v3210_v41 = vadd.f32 %v628_v23, %v3105_v25  ;;  %v1195_v42 = vadd.f32 1.0, %v2342_v35  ;;  %v822_v43 = vmul.f32 0.044715, %v3200_v32  ;;  %v1257_v34 = vmul.f32 %v1193_v33, %v745_v59 }
 0x1bb   : > { %v1260_v46 = vmul.f32 %v1196_v37, %v748_v50  ;;  %v823_v49 = vmul.f32 0.044715, %v3205_v28  ;;  %v883_v60 = vmul.f32 %v819_v39, %v3187_v15  ;;  %v1071_v63 = vmul.f32 0.7978846, %v1007_v48 }
 0x1bc   : > { %v1259_v31 = vmul.f32 %v1195_v42, %v747_v58  ;;  %v824_v62 = vmul.f32 0.044715, %v3210_v41  ;;  %v945_v10 = vmul.f32 %v881_v30, %v3165_v51  ;;  %v885_v59 = vmul.f32 %v821_v40, %v3193_v21 }
 0x1bd   : > { %v1352_v56 = vpack.c.bf16 %v1260_v46, %v1258_v44  ;;  %2347 = vtanh.f32 %v1069_v57  ;;  %v886_v1 = vmul.f32 %v822_v43, %v3200_v32  ;;  %v887_v2 = vmul.f32 %v823_v49, %v3205_v28 }
 0x1be   : > { %v632_v38 = vpop.f32.mrb[20].mxu0  ;;  %v1351_v50 = vpack.c.bf16 %v1259_v31, %v1257_v34  ;;  %2349 = vtanh.f32 %v1071_v63  ;;  %v751_v8 = vmul.f32 0.5, %v3145_v17  ;;  %v1010_v9 = vadd.f32 %v946_v52, %v3168_v55 }
 0x1bf   : > { %v3224_v58 = vadd.f32 %v632_v38, %v3103_v24  ;;  %v634_v0 = vpop.f32.mrb[21].mxu0  ;;  %1549 = vmatprep.mubr.bf16.mxu1 %v1352_v56  ;;  %v2344_v6 = vpop.eup %2343  ;;  %v1012_v11 = vadd.f32 %v948_v54, %v3174_v61  ;;  %v947_v14 = vmul.f32 %v883_v60, %v3187_v15  ;;  %v888_v16 = vmul.f32 %v824_v62, %v3210_v41 }
 0x1c0   : > { %v3229_v5 = vadd.f32 %v634_v0, %v3105_v25  ;;  %v636_v45 = vpop.f32.mrb[22].mxu0  ;;  %1550 = vmatmul.mubr.bf16.gmra.mrb[4].mxu1 %v1351_v50  ;;  %v2346_v12 = vpop.eup %2345  ;;  %v1198_v20 = vadd.f32 1.0, %v2344_v6  ;;  %v3243_v22 = vmul.f32 %v885_v59, %v3193_v21  ;;  %v1074_v17 = vmul.f32 0.7978846, %v1010_v9 }
 0x1c1   : > { %v3232_v53 = vadd.f32 %v636_v45, %v3103_v24  ;;  %v638_v7 = vpop.f32.mrb[23].mxu0  ;;  %v825_v3 = vmul.f32 0.044715, %v3224_v58  ;;  %v1200_v29 = vadd.f32 1.0, %v2346_v12  ;;  %v950_v30 = vmul.f32 %v886_v1, %v3200_v32 }
 0x1c2   : > { %v3240_v19 = vadd.f32 %v638_v7, %v3105_v25  ;;  %v3248_v13 = vmul.f32 %v887_v2, %v3205_v28  ;;  %v826_v33 = vmul.f32 0.044715, %v3229_v5  ;;  %v1076_v35 = vmul.f32 0.7978846, %v1012_v11 }
 0x1c3   : > { %v827_v36 = vmul.f32 0.044715, %v3232_v53  ;;  %v1262_v26 = vmul.f32 %v1198_v20, %v3190_v18  ;;  %v1264_v23 = vmul.f32 %v1200_v29, %v3196_v27  ;;  %2351 = vtanh.f32 %v1074_v17 }
 0x1c4   : > { %v952_v37 = vmul.f32 %v888_v16, %v3210_v41  ;;  %v828_v39 = vmul.f32 0.044715, %v3240_v19  ;;  %v3257_v42 = vmul.f32 0.5, %v3168_v55  ;;  %2353 = vtanh.f32 %v1076_v35 }
 0x1c5   : > { %v889_v43 = vmul.f32 %v825_v3, %v3224_v58  ;;  %v1354_v47 = vpack.c.bf16 %v1264_v23, %v1262_v26  ;;  %v1009_v18 = vadd.f32 %v945_v10, %v3165_v51  ;;  %v890_v27 = vmul.f32 %v826_v33, %v3229_v5 }
 0x1c6   : > { %v642_v40 = vpop.f32.mrb[24].mxu0  ;;  %v756_v31 = vmul.f32 0.5, %v3174_v61  ;;  %v1011_v55 = vadd.f32 %v947_v14, %v3187_v15  ;;  %v891_v52 = vmul.f32 %v827_v36, %v3232_v53  ;;  %v3275_v57 = vmul.f32 0.5, %v3165_v51 }
 0x1c7   : > { %v3261_v44 = vadd.f32 %v642_v40, %v3103_v24  ;;  %v644_v46 = vpop.f32.mrb[25].mxu0  ;;  %v2348_v48 = vpop.eup %2347  ;;  %1557 = vmatprep.mubr.bf16.mxu1 %v1354_v47  ;;  %v1073_v60 = vmul.f32 0.7978846, %v1009_v18  ;;  %v892_v38 = vmul.f32 %v828_v39, %v3240_v19  ;;  %v3282_v10 = vmul.f32 %v889_v43, %v3224_v58 }
 0x1c8   : > { %v3266_v49 = vadd.f32 %v644_v46, %v3105_v25  ;;  %v646_v34 = vpop.f32.mrb[26].mxu0  ;;  %v2350_v62 = vpop.eup %2349  ;;  %v1197_v50 = vadd.f32 1.0, %v2348_v48  ;;  %v1075_v63 = vmul.f32 0.7978846, %v1011_v55  ;;  %v3286_v1 = vmul.f32 %v890_v27, %v3229_v5 }
 0x1c9   : > { %v3272_v54 = vadd.f32 %v646_v34, %v3103_v24  ;;  %v648_v56 = vpop.f32.mrb[27].mxu0  ;;  %v829_v59 = vmul.f32 0.044715, %v3261_v44  ;;  %v1199_v0 = vadd.f32 1.0, %v2350_v62  ;;  %2355 = vtanh.f32 %v1073_v60 }
 0x1ca   : > { %v3279_v61 = vadd.f32 %v648_v56, %v3105_v25  ;;  %v830_v51 = vmul.f32 0.044715, %v3266_v49  ;;  %2357 = vtanh.f32 %v1075_v63  ;;  %v1261_v45 = vmul.f32 %v1197_v50, %v3178_v4 }
 0x1cb   : > { %v831_v2 = vmul.f32 0.044715, %v3272_v54  ;;  %v1263_v6 = vmul.f32 %v1199_v0, %v751_v8  ;;  %v1014_v9 = vadd.f32 %v950_v30, %v3200_v32  ;;  %v3294_v11 = vmul.f32 %v891_v52, %v3232_v53 }
 0x1cc   : > { %v832_v7 = vmul.f32 0.044715, %v3279_v61  ;;  %v3297_v12 = vmul.f32 %v892_v38, %v3240_v19  ;;  %v755_v16 = vmul.f32 0.5, %v3187_v15  ;;  %v1016_v20 = vadd.f32 %v952_v37, %v3210_v41 }
 0x1cd   : > { %v2352_v3 = vpop.eup %2351  ;;  %v893_v29 = vmul.f32 %v829_v59, %v3261_v44  ;;  %v1353_v4 = vpack.c.bf16 %v1263_v6, %v1261_v45  ;;  %v1078_v30 = vmul.f32 0.7978846, %v1014_v9  ;;  %v894_v35 = vmul.f32 %v830_v51, %v3266_v49 }
 0x1ce   : > { %v652_v14 = vpop.f32.mrb[28].mxu0  ;;  %v2354_v33 = vpop.eup %2353  ;;  %v1202_v26 = vadd.f32 1.0, %v2352_v3  ;;  %v1080_v15 = vmul.f32 0.7978846, %v1016_v20  ;;  %v895_v37 = vmul.f32 %v831_v2, %v3272_v54  ;;  %v896_v39 = vmul.f32 %v832_v7, %v3279_v61 }
 0x1cf   : > { %v3303_v8 = vadd.f32 %v652_v14, %v3103_v24  ;;  %v654_v17 = vpop.f32.mrb[29].mxu0  ;;  %1558 = vmatmul.mubr.bf16.gmra.mrb[8].mxu1 %v1353_v4  ;;  %v1204_v40 = vadd.f32 1.0, %v2354_v33  ;;  %2359 = vtanh.f32 %v1078_v30  ;;  %v758_v47 = vmul.f32 0.5, %v3200_v32 }
 0x1d0   : > { %v3307_v36 = vadd.f32 %v654_v17, %v3105_v25  ;;  %v656_v23 = vpop.f32.mrb[30].mxu0  ;;  %v760_v18 = vmul.f32 0.5, %v3210_v41  ;;  %2361 = vtanh.f32 %v1080_v15  ;;  %v3315_v27 = vmul.f32 %v893_v29, %v3261_v44 }
 0x1d1   : > { %v658_v43 = vpop.f32.mrb[31].mxu0  ;;  %v833_v46 = vmul.f32 0.044715, %v3303_v8  ;;  %v1266_v34 = vmul.f32 %v1202_v26, %v3257_v42  ;;  %v1268_v55 = vmul.f32 %v1204_v40, %v756_v31  ;;  %v3319_v48 = vadd.f32 %v656_v23, %v3103_v24 }
 0x1d2   : > { %v3322_v52 = vmul.f32 %v894_v35, %v3266_v49  ;;  %v834_v56 = vmul.f32 0.044715, %v3307_v36  ;;  %v1013_v32 = vadd.f32 %v3243_v22, %v3193_v21  ;;  %v1015_v41 = vadd.f32 %v3248_v13, %v3205_v28 }
 0x1d3   : > { %v2356_v60 = vpop.eup %2355  ;;  %v3330_v62 = vmul.f32 %v895_v37, %v3272_v54  ;;  %v3333_v42 = vmul.f32 %v896_v39, %v3279_v61  ;;  %v1356_v31 = vpack.c.bf16 %v1268_v55, %v1266_v34  ;;  %v3336_v38 = vmul.f32 0.5, %v3193_v21 }
 0x1d4   : > { %v2358_v50 = vpop.eup %2357  ;;  %v897_v63 = vmul.f32 %v833_v46, %v3303_v8  ;;  %v1201_v59 = vadd.f32 1.0, %v2356_v60  ;;  %v3340_v22 = vadd.f32 %v658_v43, %v3105_v25  ;;  %v1077_v13 = vmul.f32 0.7978846, %v1013_v32 }
 0x1d5   : > { %1565 = vmatprep.mubr.bf16.mxu1 %v1356_v31  ;;  %v835_v51 = vmul.f32 0.044715, %v3319_v48  ;;  %v1203_v2 = vadd.f32 1.0, %v2358_v50  ;;  %v1079_v7 = vmul.f32 0.7978846, %v1015_v41  ;;  %v898_v21 = vmul.f32 %v834_v56, %v3307_v36 }
 0x1d6   : > { %v662_v0 = vpop.f32.mrb[32].mxu0  ;;  %v3351_v20 = vmul.f32 0.5, %v3205_v28  ;;  %2363 = vtanh.f32 %v1077_v13  ;;  %v1265_v3 = vmul.f32 %v1201_v59, %v3275_v57  ;;  %v836_v30 = vmul.f32 0.044715, %v3340_v22 }
 0x1d7   : > { %v3344_v45 = vadd.f32 %v662_v0, %v3103_v24  ;;  %v664_v6 = vpop.f32.mrb[33].mxu0  ;;  %v1267_v29 = vmul.f32 %v1203_v2, %v755_v16  ;;  %2365 = vtanh.f32 %v1079_v7  ;;  %v1018_v28 = vadd.f32 %v3286_v1, %v3229_v5 }
 0x1d8   : > { %v3348_v9 = vadd.f32 %v664_v6, %v3105_v25  ;;  %v666_v14 = vpop.f32.mrb[34].mxu0  ;;  %v1020_v15 = vadd.f32 %v3297_v12, %v3240_v19  ;;  %v899_v39 = vmul.f32 %v835_v51, %v3319_v48  ;;  %v3371_v34 = vmul.f32 %v897_v63, %v3303_v8 }
 0x1d9   : > { %v3355_v4 = vadd.f32 %v666_v14, %v3103_v24  ;;  %v668_v17 = vpop.f32.mrb[35].mxu0  ;;  %v837_v33 = vmul.f32 0.044715, %v3344_v45  ;;  %v2360_v26 = vpop.eup %2359  ;;  %v1355_v23 = vpack.c.bf16 %v1267_v29, %v1265_v3  ;;  %v1082_v46 = vmul.f32 0.7978846, %v1018_v28 }
 0x1da   : > { %v3360_v35 = vadd.f32 %v668_v17, %v3105_v25  ;;  %v838_v57 = vmul.f32 0.044715, %v3348_v9  ;;  %v2362_v37 = vpop.eup %2361  ;;  %v1206_v40 = vadd.f32 1.0, %v2360_v26  ;;  %v3374_v55 = vmul.f32 0.5, %v3229_v5 }
 0x1db   : > { %v839_v16 = vmul.f32 0.044715, %v3355_v4  ;;  %1566 = vmatmul.mubr.bf16.gmra.mrb[12].mxu1 %v1355_v23  ;;  %v1208_v1 = vadd.f32 1.0, %v2362_v37  ;;  %v1084_v56 = vmul.f32 0.7978846, %v1020_v15  ;;  %v3377_v32 = vmul.f32 %v898_v21, %v3307_v36 }
 0x1dc   : > { %v840_v43 = vmul.f32 0.044715, %v3360_v35  ;;  %v900_v12 = vmul.f32 %v836_v30, %v3340_v22  ;;  %v901_v41 = vmul.f32 %v837_v33, %v3344_v45  ;;  %2367 = vtanh.f32 %v1082_v46 }
 0x1dd   : > { %v1270_v31 = vmul.f32 %v1206_v40, %v758_v47  ;;  %v1272_v50 = vmul.f32 %v1208_v1, %v760_v18  ;;  %2369 = vtanh.f32 %v1084_v56  ;;  %v3385_v5 = vmul.f32 %v899_v39, %v3319_v48 }
 0x1de   : > { %v672_v60 = vpop.f32.mrb[36].mxu0  ;;  %v902_v0 = vmul.f32 %v838_v57, %v3348_v9  ;;  %v903_v13 = vmul.f32 %v839_v16, %v3355_v4  ;;  %v904_v51 = vmul.f32 %v840_v43, %v3360_v35  ;;  %v1017_v18 = vadd.f32 %v3282_v10, %v3224_v58 }
 0x1df   : > { %v3382_v63 = vadd.f32 %v672_v60, %v3103_v24  ;;  %v674_v59 = vpop.f32.mrb[37].mxu0  ;;  %v1358_v6 = vpack.c.bf16 %v1272_v50, %v1270_v31  ;;  %v3399_v3 = vmul.f32 %v900_v12, %v3340_v22  ;;  %v764_v29 = vmul.f32 0.5, %v3240_v19 }
 0x1e0   : > { %v676_v2 = vpop.f32.mrb[38].mxu0  ;;  %v3391_v7 = vadd.f32 %v674_v59, %v3105_v25  ;;  %v2364_v14 = vpop.eup %2363  ;;  %v1019_v17 = vadd.f32 %v3294_v11, %v3232_v53  ;;  %v3408_v28 = vmul.f32 %v901_v41, %v3344_v45  ;;  %v1081_v23 = vmul.f32 0.7978846, %v1017_v18 }
 0x1e1   : > { %v3394_v47 = vadd.f32 %v676_v2, %v3103_v24  ;;  %v678_v21 = vpop.f32.mrb[39].mxu0  ;;  %v2366_v33 = vpop.eup %2365  ;;  %1573 = vmatprep.mubr.bf16.mxu1 %v1358_v6  ;;  %v1205_v26 = vadd.f32 1.0, %v2364_v14  ;;  %v841_v10 = vmul.f32 0.044715, %v3382_v63  ;;  %v3412_v57 = vmul.f32 %v902_v0, %v3348_v9 }
 0x1e2   : > { %v3405_v30 = vadd.f32 %v678_v21, %v3105_v25  ;;  %v3415_v19 = vmul.f32 %v903_v13, %v3355_v4  ;;  %v1207_v16 = vadd.f32 1.0, %v2366_v33  ;;  %v1083_v11 = vmul.f32 0.7978846, %v1019_v17 }
 0x1e3   : > { %v3418_v15 = vmul.f32 %v904_v51, %v3360_v35  ;;  %v842_v37 = vmul.f32 0.044715, %v3391_v7  ;;  %v843_v39 = vmul.f32 0.044715, %v3394_v47  ;;  %2371 = vtanh.f32 %v1081_v23 }
 0x1e4   : > { %v1269_v40 = vmul.f32 %v1205_v26, %v3336_v38  ;;  %v1271_v43 = vmul.f32 %v1207_v16, %v3351_v20  ;;  %2373 = vtanh.f32 %v1083_v11  ;;  %v844_v46 = vmul.f32 0.044715, %v3405_v30 }
 0x1e5   : > { %v905_v56 = vmul.f32 %v841_v10, %v3382_v63  ;;  %v761_v12 = vmul.f32 0.5, %v3224_v58  ;;  %v1022_v31 = vadd.f32 %v3322_v52, %v3266_v49  ;;  %v763_v38 = vmul.f32 0.5, %v3232_v53 }
 0x1e6   : > { %v682_v1 = vpop.f32.mrb[40].mxu0  ;;  %v2368_v50 = vpop.eup %2367  ;;  %v1357_v59 = vpack.c.bf16 %v1271_v43, %v1269_v40  ;;  %v1024_v0 = vadd.f32 %v3333_v42, %v3279_v61  ;;  %v906_v58 = vmul.f32 %v842_v37, %v3391_v7  ;;  %v907_v6 = vmul.f32 %v843_v39, %v3394_v47 }
 0x1e7   : > { %v3428_v41 = vadd.f32 %v682_v1, %v3103_v24  ;;  %v684_v60 = vpop.f32.mrb[41].mxu0  ;;  %v2370_v51 = vpop.eup %2369  ;;  %v1210_v2 = vadd.f32 1.0, %v2368_v50  ;;  %v1086_v18 = vmul.f32 0.7978846, %v1022_v31  ;;  %v908_v14 = vmul.f32 %v844_v46, %v3405_v30 }
 0x1e8   : > { %v3434_v20 = vadd.f32 %v684_v60, %v3105_v25  ;;  %v686_v13 = vpop.f32.mrb[42].mxu0  ;;  %1574 = vmatmul.mubr.bf16.gmra.mrb[16].mxu1 %v1357_v59  ;;  %v1212_v52 = vadd.f32 1.0, %v2370_v51  ;;  %v3442_v53 = vmul.f32 0.5, %v3266_v49  ;;  %v1088_v17 = vmul.f32 0.7978846, %v1024_v0 }
 0x1e9   : > { %v688_v21 = vpop.f32.mrb[43].mxu0  ;;  %v3445_v33 = vmul.f32 %v905_v56, %v3382_v63  ;;  %v845_v42 = vmul.f32 0.044715, %v3428_v41  ;;  %2375 = vtanh.f32 %v1086_v18  ;;  %v3449_v26 = vadd.f32 %v686_v13, %v3103_v24 }
 0x1ea   : > { %v1274_v10 = vmul.f32 %v1210_v2, %v3374_v55  ;;  %v1276_v23 = vmul.f32 %v1212_v52, %v764_v29  ;;  %v846_v16 = vmul.f32 0.044715, %v3434_v20  ;;  %2377 = vtanh.f32 %v1088_v17 }
 0x1eb   : > { %v3454_v11 = vmul.f32 %v906_v58, %v3391_v7  ;;  %v3457_v49 = vmul.f32 %v907_v6, %v3394_v47  ;;  %v1021_v37 = vadd.f32 %v3315_v27, %v3261_v44  ;;  %v1023_v39 = vadd.f32 %v3330_v62, %v3272_v54 }
 0x1ec   : > { %v1360_v40 = vpack.c.bf16 %v1276_v23, %v1274_v10  ;;  %v3464_v43 = vmul.f32 %v908_v14, %v3405_v30  ;;  %v768_v55 = vmul.f32 0.5, %v3279_v61  ;;  %v3468_v29 = vadd.f32 %v688_v21, %v3105_v25 }
 0x1ed   : > { %v2372_v1 = vpop.eup %2371  ;;  %v909_v56 = vmul.f32 %v845_v42, %v3428_v41  ;;  %v1085_v60 = vmul.f32 0.7978846, %v1021_v37  ;;  %v1087_v31 = vmul.f32 0.7978846, %v1023_v39  ;;  %v910_v0 = vmul.f32 %v846_v16, %v3434_v20 }
 0x1ee   : > { %v692_v46 = vpop.f32.mrb[44].mxu0  ;;  %v2374_v62 = vpop.eup %2373  ;;  %1581 = vmatprep.mubr.bf16.mxu1 %v1360_v40  ;;  %v1209_v59 = vadd.f32 1.0, %v2372_v1  ;;  %v847_v61 = vmul.f32 0.044715, %v3449_v26  ;;  %v3480_v2 = vmul.f32 0.5, %v3261_v44  ;;  %v1026_v6 = vadd.f32 %v3377_v32, %v3307_v36 }
 0x1ef   : > { %v3472_v27 = vadd.f32 %v692_v46, %v3103_v24  ;;  %v694_v50 = vpop.f32.mrb[45].mxu0  ;;  %v1211_v58 = vadd.f32 1.0, %v2374_v62  ;;  %2379 = vtanh.f32 %v1085_v60  ;;  %v3485_v21 = vmul.f32 0.5, %v3272_v54 }
 0x1f0   : > { %v3477_v13 = vadd.f32 %v694_v50, %v3105_v25  ;;  %v696_v51 = vpop.f32.mrb[46].mxu0  ;;  %2381 = vtanh.f32 %v1087_v31  ;;  %v848_v52 = vmul.f32 0.044715, %v3468_v29  ;;  %v1273_v17 = vmul.f32 %v1209_v59, %v761_v12 }
 0x1f1   : > { %v698_v18 = vpop.f32.mrb[47].mxu0  ;;  %v849_v14 = vmul.f32 0.044715, %v3472_v27  ;;  %v1275_v42 = vmul.f32 %v1211_v58, %v763_v38  ;;  %v1028_v10 = vadd.f32 %v3399_v3, %v3340_v22  ;;  %v1090_v44 = vmul.f32 0.7978846, %v1026_v6 }
 0x1f2   : > { %v3492_v23 = vmul.f32 %v909_v56, %v3428_v41  ;;  %v3495_v32 = vmul.f32 %v910_v0, %v3434_v20  ;;  %v911_v54 = vmul.f32 %v847_v61, %v3449_v26  ;;  %v850_v16 = vmul.f32 0.044715, %v3477_v13 }
 0x1f3   : > { %v2376_v37 = vpop.eup %2375  ;;  %v1359_v39 = vpack.c.bf16 %v1275_v42, %v1273_v17  ;;  %v3500_v40 = vmul.f32 0.5, %v3307_v36  ;;  %v1092_v12 = vmul.f32 0.7978846, %v1028_v10  ;;  %2383 = vtanh.f32 %v1090_v44 }
 0x1f4   : > { %v2378_v38 = vpop.eup %2377  ;;  %v1214_v3 = vadd.f32 1.0, %v2376_v37  ;;  %v912_v46 = vmul.f32 %v848_v52, %v3468_v29  ;;  %v913_v1 = vmul.f32 %v849_v14, %v3472_v27  ;;  %v3505_v56 = vadd.f32 %v696_v51, %v3103_v24 }
 0x1f5   : > { %1582 = vmatmul.mubr.bf16.gmra.mrb[20].mxu1 %v1359_v39  ;;  %v1216_v31 = vadd.f32 1.0, %v2378_v38  ;;  %2385 = vtanh.f32 %v1092_v12  ;;  %v1025_v50 = vadd.f32 %v3371_v34, %v3303_v8  ;;  %v1027_v36 = vadd.f32 %v3385_v5, %v3319_v48 }
 0x1f6   : > { %v702_v60 = vpop.f32.mrb[48].mxu0  ;;  %v3512_v59 = vmul.f32 %v911_v54, %v3449_v26  ;;  %v914_v0 = vmul.f32 %v850_v16, %v3477_v13  ;;  %v3516_v61 = vadd.f32 %v698_v18, %v3105_v25  ;;  %v1278_v6 = vmul.f32 %v1214_v3, %v3442_v53 }
 0x1f7   : > { %v704_v62 = vpop.f32.mrb[49].mxu0  ;;  %v3519_v51 = vadd.f32 %v702_v60, %v3103_v24  ;;  %v1280_v52 = vmul.f32 %v1216_v31, %v768_v55  ;;  %v1089_v34 = vmul.f32 0.7978846, %v1025_v50  ;;  %v1091_v14 = vmul.f32 0.7978846, %v1027_v36 }
 0x1f8   : > { %v706_v58 = vpop.f32.mrb[50].mxu0  ;;  %v3523_v5 = vmul.f32 %v912_v46, %v3468_v29  ;;  %v772_v42 = vmul.f32 0.5, %v3340_v22  ;;  %v851_v10 = vmul.f32 0.044715, %v3505_v56  ;;  %v3528_v18 = vadd.f32 %v704_v62, %v3105_v25 }
 0x1f9   : > { %v708_v17 = vpop.f32.mrb[51].mxu0  ;;  %v2380_v44 = vpop.eup %2379  ;;  %v1362_v54 = vpack.c.bf16 %v1280_v52, %v1278_v6  ;;  %v3531_v16 = vmul.f32 %v913_v1, %v3472_v27  ;;  %v3534_v53 = vmul.f32 0.5, %v3303_v8  ;;  %2387 = vtanh.f32 %v1089_v34 }
 0x1fa   : > { %v2382_v55 = vpop.eup %2381  ;;  %v1213_v37 = vadd.f32 1.0, %v2380_v44  ;;  %2389 = vtanh.f32 %v1091_v14  ;;  %v852_v39 = vmul.f32 0.044715, %v3516_v61  ;;  %v853_v22 = vmul.f32 0.044715, %v3519_v51 }
 0x1fb   : > { %1589 = vmatprep.mubr.bf16.mxu1 %v1362_v54  ;;  %v1215_v12 = vadd.f32 1.0, %v2382_v55  ;;  %v3539_v38 = vmul.f32 %v914_v0, %v3477_v13  ;;  %v1030_v3 = vadd.f32 %v3412_v57, %v3348_v9  ;;  %v1032_v8 = vadd.f32 %v3418_v15, %v3360_v35 }
 0x1fc   : > { %v915_v46 = vmul.f32 %v851_v10, %v3505_v56  ;;  %v771_v1 = vmul.f32 0.5, %v3319_v48  ;;  %v854_v60 = vmul.f32 0.044715, %v3528_v18  ;;  %v3549_v31 = vadd.f32 %v706_v58, %v3103_v24 }
 0x1fd   : > { %v2384_v36 = vpop.eup %2383  ;;  %v1277_v62 = vmul.f32 %v1213_v37, %v3480_v2  ;;  %v1279_v0 = vmul.f32 %v1215_v12, %v3485_v21  ;;  %v1094_v6 = vmul.f32 0.7978846, %v1030_v3  ;;  %v1096_v57 = vmul.f32 0.7978846, %v1032_v8 }
 0x1fe   : > { %v712_v50 = vpop.f32.mrb[52].mxu0  ;;  %v1218_v34 = vadd.f32 1.0, %v2384_v36  ;;  %v916_v15 = vmul.f32 %v852_v39, %v3516_v61  ;;  %v917_v14 = vmul.f32 %v853_v22, %v3519_v51  ;;  %v855_v48 = vmul.f32 0.044715, %v3549_v31 }
 0x1ff   : > { %v714_v52 = vpop.f32.mrb[53].mxu0  ;;  %v2386_v44 = vpop.eup %2385  ;;  %v1361_v58 = vpack.c.bf16 %v1279_v0, %v1277_v62  ;;  %2391 = vtanh.f32 %v1094_v6  ;;  %v1029_v54 = vadd.f32 %v3408_v28, %v3344_v45  ;;  %v1031_v2 = vadd.f32 %v3415_v19, %v3355_v4 }
 0x200   : > { %v716_v10 = vpop.f32.mrb[54].mxu0  ;;  %v1220_v55 = vadd.f32 1.0, %v2386_v44  ;;  %v3561_v37 = vmul.f32 %v915_v46, %v3505_v56  ;;  %v3564_v39 = vmul.f32 0.5, %v3348_v9  ;;  %2393 = vtanh.f32 %v1096_v57 }
 0x201   : > { %v718_v21 = vpop.f32.mrb[55].mxu0  ;;  %1590 = vmatmul.mubr.bf16.gmra.mrb[24].mxu1 %v1361_v58  ;;  %v918_v22 = vmul.f32 %v854_v60, %v3528_v18  ;;  %v1093_v12 = vmul.f32 0.7978846, %v1029_v54  ;;  %v1095_v3 = vmul.f32 0.7978846, %v1031_v2  ;;  %v3568_v8 = vadd.f32 %v708_v17, %v3105_v25 }
 0x202   : > { %v1282_v28 = vmul.f32 %v1218_v34, %v3500_v40  ;;  %v1284_v19 = vmul.f32 %v1220_v55, %v772_v42  ;;  %v3572_v36 = vmul.f32 %v916_v15, %v3516_v61  ;;  %v776_v46 = vmul.f32 0.5, %v3360_v35 }
 0x203   : > { %v2388_v62 = vpop.eup %2387  ;;  %v3576_v9 = vmul.f32 %v917_v14, %v3519_v51  ;;  %v919_v0 = vmul.f32 %v855_v48, %v3549_v31  ;;  %2395 = vtanh.f32 %v1093_v12  ;;  %v3580_v60 = vadd.f32 %v712_v50, %v3103_v24 }
 0x204   : > { %v2390_v17 = vpop.eup %2389  ;;  %v1364_v6 = vpack.c.bf16 %v1284_v19, %v1282_v28  ;;  %v1217_v57 = vadd.f32 1.0, %v2388_v62  ;;  %2397 = vtanh.f32 %v1095_v3  ;;  %v3583_v40 = vadd.f32 %v714_v52, %v3105_v25 }
 0x205   : > { %v1219_v34 = vadd.f32 1.0, %v2390_v17  ;;  %v3586_v35 = vmul.f32 %v918_v22, %v3528_v18  ;;  %v856_v15 = vmul.f32 0.044715, %v3568_v8  ;;  %v1034_v14 = vadd.f32 %v3454_v11, %v3391_v7 }
 0x206   : > { %v722_v42 = vpop.f32.mrb[56].mxu0  ;;  %1597 = vmatprep.mubr.bf16.mxu1 %v1364_v6  ;;  %v773_v50 = vmul.f32 0.5, %v3344_v45  ;;  %v775_v44 = vmul.f32 0.5, %v3355_v4  ;;  %v1036_v52 = vadd.f32 %v3464_v43, %v3405_v30  ;;  %v3596_v58 = vadd.f32 %v716_v10, %v3103_v24 }
 0x207   : > { %v724_v48 = vpop.f32.mrb[57].mxu0  ;;  %v1281_v2 = vmul.f32 %v1217_v57, %v3534_v53  ;;  %v1283_v55 = vmul.f32 %v1219_v34, %v771_v1  ;;  %v857_v22 = vmul.f32 0.044715, %v3580_v60  ;;  %v1098_v12 = vmul.f32 0.7978846, %v1034_v14 }
 0x208   : > { %v726_v54 = vpop.f32.mrb[58].mxu0  ;;  %v3603_v3 = vmul.f32 %v919_v0, %v3549_v31  ;;  %v858_v45 = vmul.f32 0.044715, %v3583_v40  ;;  %v3607_v4 = vmul.f32 0.5, %v3391_v7  ;;  %v1100_v43 = vmul.f32 0.7978846, %v1036_v52 }
 0x209   : > { %v3600_v11 = vpop.f32.mrb[59].mxu0  ;;  %v2392_v10 = vpop.eup %2391  ;;  %v1363_v28 = vpack.c.bf16 %v1283_v55, %v1281_v2  ;;  %v920_v19 = vmul.f32 %v856_v15, %v3568_v8  ;;  %2399 = vtanh.f32 %v1098_v12  ;;  %v1033_v53 = vadd.f32 %v3445_v33, %v3382_v63 }
 0x20a   : > { %v2394_v1 = vpop.eup %2393  ;;  %v1222_v62 = vadd.f32 1.0, %v2392_v10  ;;  %2401 = vtanh.f32 %v1100_v43  ;;  %v859_v0 = vmul.f32 0.044715, %v3596_v58  ;;  %v1035_v17 = vadd.f32 %v3457_v49, %v3394_v47 }
 0x20b   : > { %1598 = vmatmul.mubr.bf16.gmra.mrb[28].mxu1 %v1363_v28  ;;  %v1224_v7 = vadd.f32 1.0, %v2394_v1  ;;  %v921_v6 = vmul.f32 %v857_v22, %v3580_v60  ;;  %v1097_v57 = vmul.f32 0.7978846, %v1033_v53  ;;  %v3617_v34 = vadd.f32 %v718_v21, %v3105_v25 }
 0x20c   : > { %v922_v15 = vmul.f32 %v858_v45, %v3583_v40  ;;  %v780_v33 = vmul.f32 0.5, %v3405_v30  ;;  %v1099_v14 = vmul.f32 0.7978846, %v1035_v17  ;;  %v3622_v52 = vadd.f32 %v722_v42, %v3103_v24 }
 0x20d   : > { %v2396_v55 = vpop.eup %2395  ;;  %v1286_v49 = vmul.f32 %v1222_v62, %v3564_v39  ;;  %v1288_v12 = vmul.f32 %v1224_v7, %v776_v46  ;;  %v3626_v43 = vmul.f32 %v920_v19, %v3568_v8  ;;  %2403 = vtanh.f32 %v1097_v57 }
 0x20e   : > { %v732_v2 = vpop.f32.mrb[60].mxu0  ;;  %v2398_v21 = vpop.eup %2397  ;;  %v1221_v10 = vadd.f32 1.0, %v2396_v55  ;;  %v923_v45 = vmul.f32 %v859_v0, %v3596_v58  ;;  %2405 = vtanh.f32 %v1099_v14  ;;  %v3630_v30 = vadd.f32 %v724_v48, %v3105_v25 }
 0x20f   : > { %v734_v22 = vpop.f32.mrb[61].mxu0  ;;  %v1366_v28 = vpack.c.bf16 %v1288_v12, %v1286_v49  ;;  %v1223_v53 = vadd.f32 1.0, %v2398_v21  ;;  %v3635_v39 = vmul.f32 %v921_v6, %v3580_v60  ;;  %v860_v46 = vmul.f32 0.044715, %v3617_v34 }
 0x210   : > { %v3632_v42 = vpop.f32.mrb[62].mxu0  ;;  %v3641_v1 = vmul.f32 %v922_v15, %v3583_v40  ;;  %v777_v62 = vmul.f32 0.5, %v3382_v63  ;;  %v861_v0 = vmul.f32 0.044715, %v3622_v52  ;;  %v1038_v48 = vadd.f32 %v3495_v32, %v3434_v20 }
 0x211   : > { %v3638_v19 = vpop.f32.mrb[63].mxu0  ;;  %1605 = vmatprep.mubr.bf16.mxu1 %v1366_v28  ;;  %v1285_v17 = vmul.f32 %v1221_v10, %v773_v50  ;;  %v1287_v7 = vmul.f32 %v1223_v53, %v775_v44  ;;  %v779_v6 = vmul.f32 0.5, %v3394_v47  ;;  %v1040_v57 = vadd.f32 %v3523_v5, %v3468_v29 }
 0x212   : > { %v3651_v14 = vmul.f32 %v923_v45, %v3596_v58  ;;  %v862_v15 = vmul.f32 0.044715, %v3630_v30  ;;  %v1102_v55 = vmul.f32 0.7978846, %v1038_v48  ;;  %v3655_v63 = vadd.f32 %v726_v54, %v3103_v24 }
 0x213   : > { %v2400_v49 = vpop.eup %2399  ;;  %v1365_v12 = vpack.c.bf16 %v1287_v7, %v1285_v17  ;;  %v924_v32 = vmul.f32 %v860_v46, %v3617_v34  ;;  %v1104_v50 = vmul.f32 0.7978846, %v1040_v57  ;;  %v1037_v47 = vadd.f32 %v3492_v23, %v3428_v41 }
 0x214   : > { %v2402_v44 = vpop.eup %2401  ;;  %v1226_v21 = vadd.f32 1.0, %v2400_v49  ;;  %v925_v5 = vmul.f32 %v861_v0, %v3622_v52  ;;  %2407 = vtanh.f32 %v1102_v55  ;;  %v1039_v10 = vadd.f32 %v3512_v59, %v3449_v26 }
 0x215   : > { %1606 = vmatmul.mubr.bf16.gmra.mrb[32].mxu1 %v1365_v12  ;;  %v1228_v45 = vadd.f32 1.0, %v2402_v44  ;;  %2409 = vtanh.f32 %v1104_v50  ;;  %v1101_v54 = vmul.f32 0.7978846, %v1037_v47  ;;  %v3665_v28 = vadd.f32 %v3600_v11, %v3105_v25 }
 0x216   : > { %v926_v53 = vmul.f32 %v862_v15, %v3630_v30  ;;  %v863_v23 = vmul.f32 0.044715, %v3655_v63  ;;  %v1103_v46 = vmul.f32 0.7978846, %v1039_v10  ;;  %v3670_v48 = vadd.f32 %v732_v2, %v3103_v24 }
 0x217   : > { %v2404_v0 = vpop.eup %2403  ;;  %v1290_v17 = vmul.f32 %v1226_v21, %v3607_v4  ;;  %v1292_v59 = vmul.f32 %v1228_v45, %v780_v33  ;;  %v782_v7 = vmul.f32 0.5, %v3434_v20  ;;  %2411 = vtanh.f32 %v1101_v54 }
 0x218   : > { %v2406_v57 = vpop.eup %2405  ;;  %v1225_v55 = vadd.f32 1.0, %v2404_v0  ;;  %2413 = vtanh.f32 %v1103_v46  ;;  %v864_v11 = vmul.f32 0.044715, %v3665_v28  ;;  %v3676_v15 = vadd.f32 %v734_v22, %v3105_v25 }
 0x219   : > { %v1368_v49 = vpack.c.bf16 %v1292_v59, %v1290_v17  ;;  %v1227_v12 = vadd.f32 1.0, %v2406_v57  ;;  %v784_v2 = vmul.f32 0.5, %v3468_v29  ;;  %v865_v50 = vmul.f32 0.044715, %v3670_v48 }
 0x21a   : > { %v3681_v4 = vmul.f32 %v924_v32, %v3617_v34  ;;  %v3684_v20 = vmul.f32 %v925_v5, %v3622_v52  ;;  %v3687_v33 = vmul.f32 %v926_v53, %v3630_v30  ;;  %v927_v47 = vmul.f32 %v863_v23, %v3655_v63 }
 0x21b   : > { %1613 = vmatprep.mubr.bf16.mxu1 %v1368_v49  ;;  %v1289_v22 = vmul.f32 %v1225_v55, %v777_v62  ;;  %v1291_v44 = vmul.f32 %v1227_v12, %v779_v6  ;;  %v781_v21 = vmul.f32 0.5, %v3428_v41  ;;  %v1042_v29 = vadd.f32 %v3539_v38, %v3477_v13 }
 0x21c   : > { %v783_v10 = vmul.f32 0.5, %v3449_v26  ;;  %v928_v32 = vmul.f32 %v864_v11, %v3665_v28  ;;  %v866_v5 = vmul.f32 0.044715, %v3676_v15  ;;  %v1044_v45 = vadd.f32 %v3572_v36, %v3516_v61 }
 0x21d   : > { %v1367_v54 = vpack.c.bf16 %v1291_v44, %v1289_v22  ;;  %v929_v53 = vmul.f32 %v865_v50, %v3670_v48  ;;  %v1106_v23 = vmul.f32 0.7978846, %v1042_v29  ;;  %v3701_v62 = vadd.f32 %v3632_v42, %v3103_v24 }
 0x21e   : > { %v2408_v41 = vpop.eup %2407  ;;  %v3704_v38 = vmul.f32 %v927_v47, %v3655_v63  ;;  %v1108_v26 = vmul.f32 0.7978846, %v1044_v45  ;;  %v1041_v6 = vadd.f32 %v3531_v16, %v3472_v27  ;;  %v1043_v46 = vadd.f32 %v3561_v37, %v3505_v56 }
 0x21f   : > { %v2410_v36 = vpop.eup %2409  ;;  %1614 = vmatmul.mubr.bf16.gmra.mrb[36].mxu1 %v1367_v54  ;;  %v1230_v0 = vadd.f32 1.0, %v2408_v41  ;;  %v786_v17 = vmul.f32 0.5, %v3477_v13  ;;  %v788_v59 = vmul.f32 0.5, %v3516_v61  ;;  %2415 = vtanh.f32 %v1106_v23 }
 0x220   : > { %v1232_v24 = vadd.f32 1.0, %v2410_v36  ;;  %v930_v42 = vmul.f32 %v866_v5, %v3676_v15  ;;  %2417 = vtanh.f32 %v1108_v26  ;;  %v1105_v57 = vmul.f32 0.7978846, %v1041_v6 }
 0x221   : > { %v2412_v55 = vpop.eup %2411  ;;  %v992_v11 = vmul.f32 %v928_v32, %v3665_v28  ;;  %v3715_v16 = vmul.f32 %v929_v53, %v3670_v48  ;;  %v867_v37 = vmul.f32 0.044715, %v3701_v62  ;;  %v1107_v49 = vmul.f32 0.7978846, %v1043_v46 }
 0x222   : > { %v2414_v12 = vpop.eup %2413  ;;  %v1294_v50 = vmul.f32 %v1230_v0, %v782_v7  ;;  %v1296_v13 = vmul.f32 %v1232_v24, %v784_v2  ;;  %v1229_v47 = vadd.f32 1.0, %v2412_v55  ;;  %2419 = vtanh.f32 %v1105_v57 }
 0x223   : > { %v1231_v61 = vadd.f32 1.0, %v2414_v12  ;;  %2421 = vtanh.f32 %v1107_v49  ;;  %v3720_v22 = vadd.f32 %v3638_v19, %v3105_v25  ;;  %v1046_v44 = vadd.f32 %v3586_v35, %v3528_v18 }
 0x224   : > { %v1370_v29 = vpack.c.bf16 %v1296_v13, %v1294_v50  ;;  %v3725_v32 = vmul.f32 %v930_v42, %v3676_v15  ;;  %v785_v5 = vmul.f32 0.5, %v3472_v27  ;;  %v1048_v7 = vadd.f32 %v3626_v43, %v3568_v8 }
 0x225   : > { %v1293_v2 = vmul.f32 %v1229_v47, %v781_v21  ;;  %v1295_v45 = vmul.f32 %v1231_v61, %v783_v10  ;;  %v787_v54 = vmul.f32 0.5, %v3505_v56  ;;  %v1110_v53 = vmul.f32 0.7978846, %v1046_v44 }
 0x226   : > { %1621 = vmatprep.mubr.bf16.mxu1 %v1370_v29  ;;  %v931_v25 = vmul.f32 %v867_v37, %v3701_v62  ;;  %v1112_v19 = vmul.f32 0.7978846, %v1048_v7  ;;  %v1045_v35 = vadd.f32 %v3576_v9, %v3519_v51  ;;  %v1047_v23 = vadd.f32 %v3603_v3, %v3549_v31 }
 0x227   : > { %v1369_v41 = vpack.c.bf16 %v1295_v45, %v1293_v2  ;;  %v868_v27 = vmul.f32 0.044715, %v3720_v22  ;;  %2423 = vtanh.f32 %v1110_v53  ;;  %v1050_v43 = vadd.f32 %v3641_v1, %v3583_v40 }
 0x228   : > { %2425 = vtanh.f32 %v1112_v19  ;;  %v1109_v56 = vmul.f32 0.7978846, %v1045_v35  ;;  %v1111_v21 = vmul.f32 0.7978846, %v1047_v23  ;;  %v1052_v10 = vadd.f32 %v3681_v4, %v3617_v34 }
 0x229   : > { %v2416_v26 = vpop.eup %2415  ;;  %1622 = vmatmul.mubr.bf16.gmra.mrb[40].mxu1 %v1369_v41  ;;  %v790_v9 = vmul.f32 0.5, %v3528_v18  ;;  %v792_v6 = vmul.f32 0.5, %v3568_v8  ;;  %v1114_v3 = vmul.f32 0.7978846, %v1050_v43  ;;  %v1049_v46 = vadd.f32 %v3635_v39, %v3580_v60 }
 0x22a   : > { %v2418_v36 = vpop.eup %2417  ;;  %v1234_v0 = vadd.f32 1.0, %v2416_v26  ;;  %2427 = vtanh.f32 %v1109_v56  ;;  %v1116_v1 = vmul.f32 0.7978846, %v1052_v10  ;;  %v1051_v24 = vadd.f32 %v3651_v14, %v3596_v58 }
 0x22b   : > { %v1236_v42 = vadd.f32 1.0, %v2418_v36  ;;  %v932_v4 = vmul.f32 %v868_v27, %v3720_v22  ;;  %2429 = vtanh.f32 %v1111_v21  ;;  %v1113_v57 = vmul.f32 0.7978846, %v1049_v46 }
 0x22c   : > { %v2420_v55 = vpop.eup %2419  ;;  %v1298_v18 = vmul.f32 %v1234_v0, %v786_v17  ;;  %v995_v8 = vmul.f32 %v931_v25, %v3701_v62  ;;  %2431 = vtanh.f32 %v1114_v3  ;;  %v1115_v37 = vmul.f32 0.7978846, %v1051_v24 }
 0x22d   : > { %v2422_v49 = vpop.eup %2421  ;;  %v1300_v39 = vmul.f32 %v1236_v42, %v788_v59  ;;  %v1233_v12 = vadd.f32 1.0, %v2420_v55  ;;  %2433 = vtanh.f32 %v1116_v1  ;;  %v1054_v50 = vadd.f32 %v3687_v33, %v3630_v30 }
 0x22e   : > { %v1235_v13 = vadd.f32 1.0, %v2422_v49  ;;  %v789_v14 = vmul.f32 0.5, %v3519_v51  ;;  %2435 = vtanh.f32 %v1113_v57  ;;  %v1056_v47 = vadd.f32 %v992_v11, %v3665_v28 }
 0x22f   : > { %v1372_v61 = vpack.c.bf16 %v1300_v39, %v1298_v18  ;;  %v996_v17 = vmul.f32 %v932_v4, %v3720_v22  ;;  %2437 = vtanh.f32 %v1115_v37  ;;  %v1118_v44 = vmul.f32 0.7978846, %v1054_v50 }
 0x230   : > { %v1297_v29 = vmul.f32 %v1233_v12, %v785_v5  ;;  %v1299_v7 = vmul.f32 %v1235_v13, %v787_v54  ;;  %v1120_v2 = vmul.f32 0.7978846, %v1056_v47  ;;  %v1053_v59 = vadd.f32 %v3684_v20, %v3622_v52 }
 0x231   : > { %v2424_v45 = vpop.eup %2423  ;;  %1629 = vmatprep.mubr.bf16.mxu1 %v1372_v61  ;;  %v791_v33 = vmul.f32 0.5, %v3549_v31  ;;  %v794_v51 = vmul.f32 0.5, %v3583_v40  ;;  %2439 = vtanh.f32 %v1118_v44  ;;  %v1055_v11 = vadd.f32 %v3704_v38, %v3655_v63 }
 0x232   : > { %v2426_v53 = vpop.eup %2425  ;;  %v1371_v25 = vpack.c.bf16 %v1299_v7, %v1297_v29  ;;  %v1238_v19 = vadd.f32 1.0, %v2424_v45  ;;  %2441 = vtanh.f32 %v1120_v2  ;;  %v1117_v5 = vmul.f32 0.7978846, %v1053_v59 }
 0x233   : > { %v1240_v54 = vadd.f32 1.0, %v2426_v53  ;;  %v1119_v35 = vmul.f32 0.7978846, %v1055_v11  ;;  %v1058_v20 = vadd.f32 %v3725_v32, %v3676_v15  ;;  %v1060_v23 = vadd.f32 %v996_v17, %v3720_v22 }
 0x234   : > { %v2428_v41 = vpop.eup %2427  ;;  %1630 = vmatmul.mubr.bf16.gmra.mrb[44].mxu1 %v1371_v25  ;;  %v1302_v31 = vmul.f32 %v1238_v19, %v790_v9  ;;  %v796_v40 = vmul.f32 0.5, %v3617_v34  ;;  %v793_v27 = vmul.f32 0.5, %v3580_v60  ;;  %2443 = vtanh.f32 %v1117_v5 }
 0x235   : > { %v2430_v38 = vpop.eup %2429  ;;  %v1304_v43 = vmul.f32 %v1240_v54, %v792_v6  ;;  %v1237_v56 = vadd.f32 1.0, %v2428_v41  ;;  %2445 = vtanh.f32 %v1119_v35  ;;  %v1122_v21 = vmul.f32 0.7978846, %v1058_v20 }
 0x236   : > { %v2432_v10 = vpop.eup %2431  ;;  %v1239_v26 = vadd.f32 1.0, %v2430_v38  ;;  %v1124_v3 = vmul.f32 0.7978846, %v1060_v23  ;;  %v1057_v32 = vadd.f32 %v3715_v16, %v3670_v48  ;;  %v1059_v46 = vadd.f32 %v995_v8, %v3701_v62 }
 0x237   : > { %v2434_v36 = vpop.eup %2433  ;;  %v1374_v9 = vpack.c.bf16 %v1304_v43, %v1302_v31  ;;  %v1301_v0 = vmul.f32 %v1237_v56, %v789_v14  ;;  %v1242_v34 = vadd.f32 1.0, %v2432_v10  ;;  %2447 = vtanh.f32 %v1122_v21  ;;  %v1317_v10 = vld [vmem:[#allocation2] sm:$0xff] }
 0x238   : > { %v2436_v60 = vpop.eup %2435  ;;  %v1303_v1 = vmul.f32 %v1239_v26, %v791_v33  ;;  %v1244_v24 = vadd.f32 1.0, %v2434_v36  ;;  %2449 = vtanh.f32 %v1124_v3  ;;  %v1121_v6 = vmul.f32 0.7978846, %v1057_v32 }
 0x239   : > { %v2438_v42 = vpop.eup %2437  ;;  %1637 = vmatprep.mubr.bf16.mxu1 %v1374_v9  ;;  %v1306_v4 = vmul.f32 %v1242_v34, %v794_v51  ;;  %v795_v57 = vmul.f32 0.5, %v3596_v58  ;;  %v1241_v55 = vadd.f32 1.0, %v2436_v60  ;;  %v1123_v18 = vmul.f32 0.7978846, %v1059_v46  ;;  %v1318_v46 = vld [vmem:[#allocation2 + $0x8] sm:$0xff]  ;;  %v1319_v34 = vld [vmem:[#allocation2 + $0x10] sm:$0xff] }
 0x23a   : > { %v1373_v16 = vpack.c.bf16 %v1303_v1, %v1301_v0  ;;  %v1308_v37 = vmul.f32 %v1244_v24, %v796_v40  ;;  %v1243_v8 = vadd.f32 1.0, %v2438_v42  ;;  %2451 = vtanh.f32 %v1121_v6  ;;  %v1320_v6 = vld [vmem:[#allocation2 + $0x18] sm:$0xff] }
 0x23b   : > { %v2440_v49 = vpop.eup %2439  ;;  %2453 = vtanh.f32 %v1123_v18  ;;  %v1305_v50 = vmul.f32 %v1241_v55, %v793_v27  ;;  %v798_v47 = vmul.f32 0.5, %v3630_v30  ;;  %v800_v61 = vmul.f32 0.5, %v3665_v28 }
 0x23c   : > { %v2442_v39 = vpop.eup %2441  ;;  %1638 = vmatmul.mubr.bf16.gmra.mrb[48].mxu1 %v1373_v16  ;;  %v1376_v12 = vpack.c.bf16 %v1308_v37, %v1306_v4  ;;  %v1307_v13 = vmul.f32 %v1243_v8, %v795_v57  ;;  %v1246_v14 = vadd.f32 1.0, %v2440_v49  ;;  %v797_v45 = vmul.f32 0.5, %v3622_v52  ;;  %v1321_v16 = vld [vmem:[#allocation2 + $0x20] sm:$0xff] }
 0x23d   : > { %v1248_v17 = vadd.f32 1.0, %v2442_v39  ;;  %v799_v33 = vmul.f32 0.5, %v3655_v63  ;;  %v802_v28 = vmul.f32 0.5, %v3676_v15  ;;  %v804_v54 = vmul.f32 0.5, %v3720_v22  ;;  %v1322_v39 = vld [vmem:[#allocation2 + $0x28] sm:$0xff] }
 0x23e   : > { %v2444_v58 = vpop.eup %2443  ;;  %1645 = vmatprep.mubr.bf16.mxu1 %v1376_v12  ;;  %v1375_v44 = vpack.c.bf16 %v1307_v13, %v1305_v50  ;;  %v1310_v7 = vmul.f32 %v1246_v14, %v798_v47  ;;  %v801_v40 = vmul.f32 0.5, %v3670_v48  ;;  %v803_v27 = vmul.f32 0.5, %v3701_v62 }
 0x23f   : > { %v2446_v29 = vpop.eup %2445  ;;  %v1312_v2 = vmul.f32 %v1248_v17, %v800_v61  ;;  %v1245_v59 = vadd.f32 1.0, %v2444_v58  ;;  %v1323_v61 = vld [vmem:[#allocation2 + $0x30] sm:$0xff] }
 0x240   : > { %v1247_v51 = vadd.f32 1.0, %v2446_v29  ;;  %v1324_v29 = vld [vmem:[#allocation2 + $0x38] sm:$0xff] }
 0x241   : > { %v2448_v11 = vpop.eup %2447  ;;  %v1378_v53 = vpack.c.bf16 %v1312_v2, %v1310_v7  ;;  %v1309_v19 = vmul.f32 %v1245_v59, %v797_v45 }
 0x242   : > { %v2450_v25 = vpop.eup %2449  ;;  %v1311_v30 = vmul.f32 %v1247_v51, %v799_v33  ;;  %v1250_v5 = vadd.f32 1.0, %v2448_v11  ;;  %v1325_v51 = vld [vmem:[#allocation2 + $0x40] sm:$0xff] }
 0x243   : > { %v1252_v35 = vadd.f32 1.0, %v2450_v25 }
 0x244   : > { %v2452_v20 = vpop.eup %2451  ;;  %1646 = vmatmul.mubr.bf16.gmra.mrb[52].mxu1 %v1375_v44  ;;  %v1377_v23 = vpack.c.bf16 %v1311_v30, %v1309_v19  ;;  %v1314_v52 = vmul.f32 %v1250_v5, %v802_v28  ;;  %v1326_v19 = vld [vmem:[#allocation2 + $0x48] sm:$0xff] }
 0x245   : > { %v2454_v41 = vpop.eup %2453  ;;  %1653 = vmatprep.mubr.bf16.mxu1 %v1378_v53  ;;  %v1316_v31 = vmul.f32 %v1252_v35, %v804_v54  ;;  %v1249_v63 = vadd.f32 1.0, %v2452_v20  ;;  %v1327_v20 = vld [vmem:[#allocation2 + $0x50] sm:$0xff] }
 0x246   : > { %v1251_v38 = vadd.f32 1.0, %v2454_v41 }
 0x247   : > { %v1380_v43 = vpack.c.bf16 %v1316_v31, %v1314_v52  ;;  %v1313_v56 = vmul.f32 %v1249_v63, %v801_v40  ;;  %v1328_v31 = vld [vmem:[#allocation2 + $0x58] sm:$0xff] }
 0x248   : > { %v1315_v21 = vmul.f32 %v1251_v38, %v803_v27 }
 0x24a   : > { %v1379_v15 = vpack.c.bf16 %v1315_v21, %v1313_v56  ;;  %v1329_v56 = vld [vmem:[#allocation2 + $0x60] sm:$0xff] }
 0x24c   : > { %1654 = vmatmul.mubr.bf16.gmra.mrb[56].mxu1 %v1377_v23 }
 0x24d   : > { %1661 = vmatprep.mubr.bf16.mxu1 %v1380_v43 }
 0x254   : > { %1662 = vmatmul.mubr.bf16.gmra.mrb[60].mxu1 %v1379_v15 }
 0x28b   : > { %v2070_v22 = vpop.f32.mrb[0].mxu1 }
 0x28c   : > { %v2071_v26 = vpop.f32.mrb[1].mxu1 }
 0x28d   : > { %v2072_v3 = vadd.f32 %v2071_v26, %v2070_v22  ;;  %v2073_v32 = vpop.f32.mrb[2].mxu1 }
 0x28e   : > { %v2074_v36 = vpop.f32.mrb[3].mxu1 }
 0x28f   : > { %v1670_v9 = vadd.f32 %v2072_v3, %v1317_v10  ;;  %v2075_v0 = vadd.f32 %v2074_v36, %v2073_v32  ;;  %v1330_v10 = vld [vmem:[#allocation2 + $0x68] sm:$0xff] }
 0x291   : > { %1702 = vst [vmem:[#allocation2] sm:$0xff] %v1670_v9  ;;  %v1671_v48 = vadd.f32 %v2075_v0, %v1318_v46  ;;  %v1331_v9 = vld [vmem:[#allocation2 + $0x70] sm:$0xff] }
 0x293   : > { %1703 = vst [vmem:[#allocation2 + $0x8] sm:$0xff] %v1671_v48  ;;  %v2076_v62 = vpop.f32.mrb[4].mxu1 }
 0x294   : > { %v2077_v60 = vpop.f32.mrb[5].mxu1 }
 0x295   : > { %v2078_v1 = vadd.f32 %v2077_v60, %v2076_v62  ;;  %v2079_v24 = vpop.f32.mrb[6].mxu1 }
 0x296   : > { %v2080_v42 = vpop.f32.mrb[7].mxu1 }
 0x297   : > { %v1672_v4 = vadd.f32 %v2078_v1, %v1319_v34  ;;  %v2081_v57 = vadd.f32 %v2080_v42, %v2079_v24  ;;  %v1332_v34 = vld [vmem:[#allocation2 + $0x78] sm:$0xff] }
 0x299   : > { %1704 = vst [vmem:[#allocation2 + $0x10] sm:$0xff] %v1672_v4  ;;  %v1673_v55 = vadd.f32 %v2081_v57, %v1320_v6  ;;  %v1333_v4 = vld [vmem:[#allocation2 + $0x80] sm:$0xff] }
 0x29b   : > { %1705 = vst [vmem:[#allocation2 + $0x18] sm:$0xff] %v1673_v55 }
 0x2a2   : > { %v2082_v18 = vpop.f32.mrb[8].mxu1 }
 0x2a3   : > { %v2083_v37 = vpop.f32.mrb[9].mxu1 }
 0x2a4   : > { %v2084_v8 = vadd.f32 %v2083_v37, %v2082_v18  ;;  %v2085_v49 = vpop.f32.mrb[10].mxu1 }
 0x2a5   : > { %v2086_v12 = vpop.f32.mrb[11].mxu1 }
 0x2a6   : > { %v1674_v50 = vadd.f32 %v2084_v8, %v1321_v16  ;;  %v2087_v13 = vadd.f32 %v2086_v12, %v2085_v49  ;;  %v1334_v16 = vld [vmem:[#allocation2 + $0x88] sm:$0xff] }
 0x2a8   : > { %1706 = vst [vmem:[#allocation2 + $0x20] sm:$0xff] %v1674_v50  ;;  %v1675_v14 = vadd.f32 %v2087_v13, %v1322_v39  ;;  %v1335_v50 = vld [vmem:[#allocation2 + $0x90] sm:$0xff] }
 0x2aa   : > { %1707 = vst [vmem:[#allocation2 + $0x28] sm:$0xff] %v1675_v14 }
 0x2ae   : > { %v2088_v47 = vpop.f32.mrb[12].mxu1 }
 0x2af   : > { %v2089_v17 = vpop.f32.mrb[13].mxu1 }
 0x2b0   : > { %v2090_v58 = vadd.f32 %v2089_v17, %v2088_v47  ;;  %v2091_v44 = vpop.f32.mrb[14].mxu1 }
 0x2b1   : > { %v2092_v7 = vpop.f32.mrb[15].mxu1 }
 0x2b2   : > { %v1676_v2 = vadd.f32 %v2090_v58, %v1323_v61  ;;  %v2093_v59 = vadd.f32 %v2092_v7, %v2091_v44  ;;  %v1336_v61 = vld [vmem:[#allocation2 + $0x98] sm:$0xff] }
 0x2b4   : > { %1708 = vst [vmem:[#allocation2 + $0x30] sm:$0xff] %v1676_v2  ;;  %v1677_v45 = vadd.f32 %v2093_v59, %v1324_v29  ;;  %v1337_v2 = vld [vmem:[#allocation2 + $0xa0] sm:$0xff] }
 0x2b6   : > { %1709 = vst [vmem:[#allocation2 + $0x38] sm:$0xff] %v1677_v45 }
 0x2bb   : > { %v2094_v33 = vpop.f32.mrb[16].mxu1 }
 0x2bc   : > { %v2095_v11 = vpop.f32.mrb[17].mxu1 }
 0x2bd   : > { %v2096_v53 = vadd.f32 %v2095_v11, %v2094_v33  ;;  %v2097_v25 = vpop.f32.mrb[18].mxu1 }
 0x2be   : > { %v2098_v30 = vpop.f32.mrb[19].mxu1 }
 0x2bf   : > { %v1678_v5 = vadd.f32 %v2096_v53, %v1325_v51  ;;  %v2099_v28 = vadd.f32 %v2098_v30, %v2097_v25  ;;  %v1338_v51 = vld [vmem:[#allocation2 + $0xa8] sm:$0xff] }
 0x2c1   : > { %1710 = vst [vmem:[#allocation2 + $0x40] sm:$0xff] %v1678_v5  ;;  %v1679_v54 = vadd.f32 %v2099_v28, %v1326_v19  ;;  %v1339_v5 = vld [vmem:[#allocation2 + $0xb0] sm:$0xff] }
 0x2c3   : > { %1711 = vst [vmem:[#allocation2 + $0x48] sm:$0xff] %v1679_v54 }
 0x2c8   : > { %v2100_v35 = vpop.f32.mrb[20].mxu1 }
 0x2c9   : > { %v2101_v23 = vpop.f32.mrb[21].mxu1 }
 0x2ca   : > { %v2102_v41 = vadd.f32 %v2101_v23, %v2100_v35  ;;  %v2103_v52 = vpop.f32.mrb[22].mxu1 }
 0x2cb   : > { %v2104_v63 = vpop.f32.mrb[23].mxu1 }
 0x2cc   : > { %v1680_v40 = vadd.f32 %v2102_v41, %v1327_v20  ;;  %v2105_v27 = vadd.f32 %v2104_v63, %v2103_v52  ;;  %v1340_v20 = vld [vmem:[#allocation2 + $0xb8] sm:$0xff] }
 0x2ce   : > { %1712 = vst [vmem:[#allocation2 + $0x50] sm:$0xff] %v1680_v40  ;;  %v1681_v38 = vadd.f32 %v2105_v27, %v1328_v31  ;;  %v1341_v40 = vld [vmem:[#allocation2 + $0xc0] sm:$0xff] }
 0x2d0   : > { %1713 = vst [vmem:[#allocation2 + $0x58] sm:$0xff] %v1681_v38 }
 0x2d4   : > { %v2106_v43 = vpop.f32.mrb[24].mxu1 }
 0x2d5   : > { %v2107_v21 = vpop.f32.mrb[25].mxu1 }
 0x2d6   : > { %v2108_v15 = vadd.f32 %v2107_v21, %v2106_v43  ;;  %v2109_v22 = vpop.f32.mrb[26].mxu1 }
 0x2d7   : > { %v2110_v26 = vpop.f32.mrb[27].mxu1 }
 0x2d8   : > { %v1682_v3 = vadd.f32 %v2108_v15, %v1329_v56  ;;  %v2111_v32 = vadd.f32 %v2110_v26, %v2109_v22  ;;  %v1342_v56 = vld [vmem:[#allocation2 + $0xc8] sm:$0xff] }
 0x2da   : > { %1714 = vst [vmem:[#allocation2 + $0x60] sm:$0xff] %v1682_v3  ;;  %v1683_v46 = vadd.f32 %v2111_v32, %v1330_v10  ;;  %v1343_v3 = vld [vmem:[#allocation2 + $0xd0] sm:$0xff] }
 0x2dc   : > { %1715 = vst [vmem:[#allocation2 + $0x68] sm:$0xff] %v1683_v46 }
 0x2de   : > { %v2112_v36 = vpop.f32.mrb[28].mxu1 }
 0x2df   : > { %v2113_v0 = vpop.f32.mrb[29].mxu1 }
 0x2e0   : > { %v2114_v48 = vadd.f32 %v2113_v0, %v2112_v36  ;;  %v2115_v62 = vpop.f32.mrb[30].mxu1 }
 0x2e1   : > { %v2116_v60 = vpop.f32.mrb[31].mxu1 }
 0x2e2   : > { %v1684_v1 = vadd.f32 %v2114_v48, %v1331_v9  ;;  %v2117_v24 = vadd.f32 %v2116_v60, %v2115_v62  ;;  %v1344_v9 = vld [vmem:[#allocation2 + $0xd8] sm:$0xff] }
 0x2e4   : > { %1716 = vst [vmem:[#allocation2 + $0x70] sm:$0xff] %v1684_v1  ;;  %v1685_v6 = vadd.f32 %v2117_v24, %v1332_v34  ;;  %v1345_v1 = vld [vmem:[#allocation2 + $0xe0] sm:$0xff] }
 0x2e6   : > { %1717 = vst [vmem:[#allocation2 + $0x78] sm:$0xff] %v1685_v6 }
 0x2e8   : > { %v2118_v42 = vpop.f32.mrb[32].mxu1 }
 0x2e9   : > { %v2119_v57 = vpop.f32.mrb[33].mxu1 }
 0x2ea   : > { %v2120_v55 = vadd.f32 %v2119_v57, %v2118_v42  ;;  %v2121_v18 = vpop.f32.mrb[34].mxu1 }
 0x2eb   : > { %v2122_v37 = vpop.f32.mrb[35].mxu1 }
 0x2ec   : > { %v1686_v8 = vadd.f32 %v2120_v55, %v1333_v4  ;;  %v2123_v49 = vadd.f32 %v2122_v37, %v2121_v18  ;;  %v1346_v4 = vld [vmem:[#allocation2 + $0xe8] sm:$0xff] }
 0x2ee   : > { %1718 = vst [vmem:[#allocation2 + $0x80] sm:$0xff] %v1686_v8  ;;  %v1687_v39 = vadd.f32 %v2123_v49, %v1334_v16  ;;  %v1347_v8 = vld [vmem:[#allocation2 + $0xf0] sm:$0xff] }
 0x2f0   : > { %1719 = vst [vmem:[#allocation2 + $0x88] sm:$0xff] %v1687_v39 }
 0x2f2   : > { %v2124_v12 = vpop.f32.mrb[36].mxu1 }
 0x2f3   : > { %v2125_v13 = vpop.f32.mrb[37].mxu1 }
 0x2f4   : > { %v2126_v14 = vadd.f32 %v2125_v13, %v2124_v12  ;;  %v2127_v47 = vpop.f32.mrb[38].mxu1 }
 0x2f5   : > { %v2128_v17 = vpop.f32.mrb[39].mxu1 }
 0x2f6   : > { %v1688_v58 = vadd.f32 %v2126_v14, %v1335_v50  ;;  %v2129_v44 = vadd.f32 %v2128_v17, %v2127_v47  ;;  %v1348_v50 = vld [vmem:[#allocation2 + $0xf8] sm:$0xff]  ;;  %v1738_v17 = vld [vmem:[#allocation2] sm:$0xff] (!%p2043_p2) }
 0x2f8   : > { %1720 = vst [vmem:[#allocation2 + $0x90] sm:$0xff] %v1688_v58  ;;  %v1689_v29 = vadd.f32 %v2129_v44, %v1336_v61  ;;  %v3781_v58 = vld [vmem:[%s3969_s16] ss:$0 sm:$0xff] (!%p2043_p2)  ;;  %v1739_v44 = vld [vmem:[#allocation2 + $0x8] sm:$0xff] (!%p2043_p2) }
 0x2fa   : > { %1721 = vst [vmem:[#allocation2 + $0x98] sm:$0xff] %v1689_v29  ;;  %v1777_v29 = vadd.f32 (!%p2043_p2), %v3781_v58, %v1738_v17 }
 0x2fc   : > { %v2130_v7 = vpop.f32.mrb[40].mxu1  ;;  %1809 = vst [vmem:[%s3015_s4] sm:$0xff] (!%p2043_p2), %v1777_v29 }
 0x2fd   : > { %v2131_v59 = vpop.f32.mrb[41].mxu1 }
 0x2fe   : > { %v2132_v45 = vadd.f32 %v2131_v59, %v2130_v7  ;;  %v2133_v33 = vpop.f32.mrb[42].mxu1  ;;  %v1778_v7 = vadd.f32 (!%p2043_p2), %v3781_v58, %v1739_v44  ;;  %v1741_v59 = vld [vmem:[#allocation2 + $0x18] sm:$0xff] (!%p2043_p2) }
 0x2ff   : > { %v2134_v11 = vpop.f32.mrb[43].mxu1 }
 0x300   : > { %v1690_v53 = vadd.f32 %v2132_v45, %v1337_v2  ;;  %v2135_v25 = vadd.f32 %v2134_v11, %v2133_v33  ;;  %v1740_v2 = vld [vmem:[#allocation2 + $0x10] sm:$0xff] (!%p2043_p2)  ;;  %v1742_v45 = vld [vmem:[#allocation2 + $0x20] sm:$0xff] (!%p2043_p2)  ;;  %1810 = vst [vmem:[%s3015_s4 + $0x8] sm:$0xff] (!%p2043_p2), %v1778_v7 }
 0x301   : > { %v1779_v33 = vadd.f32 (!%p2043_p2), %v3781_v58, %v1740_v2  ;;  %v1781_v11 = vadd.f32 (!%p2043_p2), %v3781_v58, %v1742_v45 }
 0x302   : > { %1722 = vst [vmem:[#allocation2 + $0xa0] sm:$0xff] %v1690_v53  ;;  %v1691_v19 = vadd.f32 %v2135_v25, %v1338_v51  ;;  %v1780_v51 = vadd.f32 (!%p2043_p2), %v3781_v58, %v1741_v59  ;;  %v1743_v53 = vld [vmem:[#allocation2 + $0x28] sm:$0xff] (!%p2043_p2)  ;;  %v1744_v25 = vld [vmem:[#allocation2 + $0x30] sm:$0xff] (!%p2043_p2) }
 0x303   : > { %1811 = vst [vmem:[%s3015_s4 + $0x10] sm:$0xff] (!%p2043_p2), %v1779_v33  ;;  %1813 = vst [vmem:[%s3015_s4 + $0x20] sm:$0xff] (!%p2043_p2), %v1781_v11 }
 0x304   : > { %1723 = vst [vmem:[#allocation2 + $0xa8] sm:$0xff] %v1691_v19  ;;  %v1745_v19 = vld [vmem:[#allocation2 + $0x38] sm:$0xff] (!%p2043_p2)  ;;  %1812 = vst [vmem:[%s3015_s4 + $0x18] sm:$0xff] (!%p2043_p2), %v1780_v51 }
 0x307   : > { %v2136_v30 = vpop.f32.mrb[44].mxu1 }
 0x308   : > { %v2137_v28 = vpop.f32.mrb[45].mxu1 }
 0x309   : > { %v2138_v54 = vadd.f32 %v2137_v28, %v2136_v30  ;;  %v2139_v35 = vpop.f32.mrb[46].mxu1  ;;  %v1782_v30 = vadd.f32 (!%p2043_p2), %v3781_v58, %v1743_v53  ;;  %v1784_v28 = vadd.f32 (!%p2043_p2), %v3781_v58, %v1745_v19 }
 0x30a   : > { %v2140_v23 = vpop.f32.mrb[47].mxu1 }
 0x30b   : > { %v1692_v41 = vadd.f32 %v2138_v54, %v1339_v5  ;;  %v2141_v52 = vadd.f32 %v2140_v23, %v2139_v35  ;;  %v1783_v5 = vadd.f32 (!%p2043_p2), %v3781_v58, %v1744_v25  ;;  %v1746_v54 = vld [vmem:[#allocation2 + $0x40] sm:$0xff] (!%p2043_p2)  ;;  %v1747_v35 = vld [vmem:[#allocation2 + $0x48] sm:$0xff] (!%p2043_p2)  ;;  %1814 = vst [vmem:[%s3015_s4 + $0x28] sm:$0xff] (!%p2043_p2), %v1782_v30  ;;  %1816 = vst [vmem:[%s3015_s4 + $0x38] sm:$0xff] (!%p2043_p2), %v1784_v28 }
 0x30c   : > { %v1785_v23 = vadd.f32 (!%p2043_p2), %v3781_v58, %v1746_v54 }
 0x30d   : > { %1724 = vst [vmem:[#allocation2 + $0xb0] sm:$0xff] %v1692_v41  ;;  %v1693_v31 = vadd.f32 %v2141_v52, %v1340_v20  ;;  %v1748_v20 = vld [vmem:[#allocation2 + $0x50] sm:$0xff] (!%p2043_p2)  ;;  %v1786_v41 = vadd.f32 (!%p2043_p2), %v3781_v58, %v1747_v35  ;;  %1815 = vst [vmem:[%s3015_s4 + $0x30] sm:$0xff] (!%p2043_p2), %v1783_v5 }
 0x30e   : > { %v1787_v52 = vadd.f32 (!%p2043_p2), %v3781_v58, %v1748_v20  ;;  %1817 = vst [vmem:[%s3015_s4 + $0x40] sm:$0xff] (!%p2043_p2), %v1785_v23 }
 0x30f   : > { %1725 = vst [vmem:[#allocation2 + $0xb8] sm:$0xff] %v1693_v31  ;;  %v2142_v63 = vpop.f32.mrb[48].mxu1  ;;  %v1749_v31 = vld [vmem:[#allocation2 + $0x58] sm:$0xff] (!%p2043_p2)  ;;  %1818 = vst [vmem:[%s3015_s4 + $0x48] sm:$0xff] (!%p2043_p2), %v1786_v41 }
 0x310   : > { %v2143_v27 = vpop.f32.mrb[49].mxu1  ;;  %1819 = vst [vmem:[%s3015_s4 + $0x50] sm:$0xff] (!%p2043_p2), %v1787_v52 }
 0x311   : > { %v2144_v38 = vadd.f32 %v2143_v27, %v2142_v63  ;;  %v2145_v43 = vpop.f32.mrb[50].mxu1  ;;  %v1750_v63 = vld [vmem:[#allocation2 + $0x60] sm:$0xff] (!%p2043_p2)  ;;  %v1788_v27 = vadd.f32 (!%p2043_p2), %v3781_v58, %v1749_v31 }
 0x312   : > { %v2146_v21 = vpop.f32.mrb[51].mxu1 }
 0x313   : > { %v1694_v15 = vadd.f32 %v2144_v38, %v1341_v40  ;;  %v2147_v22 = vadd.f32 %v2146_v21, %v2145_v43  ;;  %v1751_v40 = vld [vmem:[#allocation2 + $0x68] sm:$0xff] (!%p2043_p2)  ;;  %v1789_v38 = vadd.f32 (!%p2043_p2), %v3781_v58, %v1750_v63  ;;  %v1753_v21 = vld [vmem:[#allocation2 + $0x78] sm:$0xff] (!%p2043_p2)  ;;  %1820 = vst [vmem:[%s3015_s4 + $0x58] sm:$0xff] (!%p2043_p2), %v1788_v27 }
 0x314   : > { %v1790_v43 = vadd.f32 (!%p2043_p2), %v3781_v58, %v1751_v40 }
 0x315   : > { %1726 = vst [vmem:[#allocation2 + $0xc0] sm:$0xff] %v1694_v15  ;;  %v1695_v10 = vadd.f32 %v2147_v22, %v1342_v56  ;;  %v1752_v56 = vld [vmem:[#allocation2 + $0x70] sm:$0xff] (!%p2043_p2)  ;;  %v1754_v15 = vld [vmem:[#allocation2 + $0x80] sm:$0xff] (!%p2043_p2)  ;;  %1821 = vst [vmem:[%s3015_s4 + $0x60] sm:$0xff] (!%p2043_p2), %v1789_v38 }
 0x316   : > { %v1791_v22 = vadd.f32 (!%p2043_p2), %v3781_v58, %v1752_v56  ;;  %1822 = vst [vmem:[%s3015_s4 + $0x68] sm:$0xff] (!%p2043_p2), %v1790_v43 }
 0x317   : > { %1727 = vst [vmem:[#allocation2 + $0xc8] sm:$0xff] %v1695_v10  ;;  %v2148_v26 = vpop.f32.mrb[52].mxu1  ;;  %v1792_v10 = vadd.f32 (!%p2043_p2), %v3781_v58, %v1753_v21 }
 0x318   : > { %v2149_v32 = vpop.f32.mrb[53].mxu1  ;;  %1823 = vst [vmem:[%s3015_s4 + $0x70] sm:$0xff] (!%p2043_p2), %v1791_v22 }
 0x319   : > { %v2150_v46 = vadd.f32 %v2149_v32, %v2148_v26  ;;  %v2151_v36 = vpop.f32.mrb[54].mxu1  ;;  %v1793_v26 = vadd.f32 (!%p2043_p2), %v3781_v58, %v1754_v15  ;;  %v1756_v32 = vld [vmem:[#allocation2 + $0x90] sm:$0xff] (!%p2043_p2)  ;;  %1824 = vst [vmem:[%s3015_s4 + $0x78] sm:$0xff] (!%p2043_p2), %v1792_v10 }
 0x31a   : > { %v2152_v0 = vpop.f32.mrb[55].mxu1 }
 0x31b   : > { %v1696_v48 = vadd.f32 %v2150_v46, %v1343_v3  ;;  %v2153_v62 = vadd.f32 %v2152_v0, %v2151_v36  ;;  %v1755_v3 = vld [vmem:[#allocation2 + $0x88] sm:$0xff] (!%p2043_p2)  ;;  %v1757_v46 = vld [vmem:[#allocation2 + $0x98] sm:$0xff] (!%p2043_p2)  ;;  %1825 = vst [vmem:[%s3015_s4 + $0x80] sm:$0xff] (!%p2043_p2), %v1793_v26 }
 0x31c   : > { %v1794_v36 = vadd.f32 (!%p2043_p2), %v3781_v58, %v1755_v3  ;;  %v1796_v0 = vadd.f32 (!%p2043_p2), %v3781_v58, %v1757_v46 }
 0x31d   : > { %1728 = vst [vmem:[#allocation2 + $0xd0] sm:$0xff] %v1696_v48  ;;  %v1697_v34 = vadd.f32 %v2153_v62, %v1344_v9  ;;  %v1795_v9 = vadd.f32 (!%p2043_p2), %v3781_v58, %v1756_v32  ;;  %v1758_v48 = vld [vmem:[#allocation2 + $0xa0] sm:$0xff] (!%p2043_p2)  ;;  %v1759_v62 = vld [vmem:[#allocation2 + $0xa8] sm:$0xff] (!%p2043_p2) }
 0x31e   : > { %1826 = vst [vmem:[%s3015_s4 + $0x88] sm:$0xff] (!%p2043_p2), %v1794_v36  ;;  %1828 = vst [vmem:[%s3015_s4 + $0x98] sm:$0xff] (!%p2043_p2), %v1796_v0 }
 0x31f   : > { %1729 = vst [vmem:[#allocation2 + $0xd8] sm:$0xff] %v1697_v34  ;;  %v2154_v60 = vpop.f32.mrb[56].mxu1  ;;  %v1760_v34 = vld [vmem:[#allocation2 + $0xb0] sm:$0xff] (!%p2043_p2)  ;;  %1827 = vst [vmem:[%s3015_s4 + $0x90] sm:$0xff] (!%p2043_p2), %v1795_v9 }
 0x320   : > { %v2155_v24 = vpop.f32.mrb[57].mxu1 }
 0x321   : > { %v2156_v6 = vadd.f32 %v2155_v24, %v2154_v60  ;;  %v2157_v42 = vpop.f32.mrb[58].mxu1  ;;  %v1797_v60 = vadd.f32 (!%p2043_p2), %v3781_v58, %v1758_v48  ;;  %v1799_v24 = vadd.f32 (!%p2043_p2), %v3781_v58, %v1760_v34 }
 0x322   : > { %v2158_v57 = vpop.f32.mrb[59].mxu1 }
 0x323   : > { %v1698_v55 = vadd.f32 %v2156_v6, %v1345_v1  ;;  %v2159_v18 = vadd.f32 %v2158_v57, %v2157_v42  ;;  %v1798_v1 = vadd.f32 (!%p2043_p2), %v3781_v58, %v1759_v62  ;;  %v1761_v6 = vld [vmem:[#allocation2 + $0xb8] sm:$0xff] (!%p2043_p2)  ;;  %v1762_v42 = vld [vmem:[#allocation2 + $0xc0] sm:$0xff] (!%p2043_p2)  ;;  %1829 = vst [vmem:[%s3015_s4 + $0xa0] sm:$0xff] (!%p2043_p2), %v1797_v60  ;;  %1831 = vst [vmem:[%s3015_s4 + $0xb0] sm:$0xff] (!%p2043_p2), %v1799_v24 }
 0x324   : > { %v1800_v57 = vadd.f32 (!%p2043_p2), %v3781_v58, %v1761_v6 }
 0x325   : > { %1730 = vst [vmem:[#allocation2 + $0xe0] sm:$0xff] %v1698_v55  ;;  %v1699_v16 = vadd.f32 %v2159_v18, %v1346_v4  ;;  %v1763_v4 = vld [vmem:[#allocation2 + $0xc8] sm:$0xff] (!%p2043_p2)  ;;  %v1801_v55 = vadd.f32 (!%p2043_p2), %v3781_v58, %v1762_v42  ;;  %1830 = vst [vmem:[%s3015_s4 + $0xa8] sm:$0xff] (!%p2043_p2), %v1798_v1 }
 0x326   : > { %v1802_v18 = vadd.f32 (!%p2043_p2), %v3781_v58, %v1763_v4  ;;  %1832 = vst [vmem:[%s3015_s4 + $0xb8] sm:$0xff] (!%p2043_p2), %v1800_v57 }
 0x327   : > { %1731 = vst [vmem:[#allocation2 + $0xe8] sm:$0xff] %v1699_v16  ;;  %v2160_v37 = vpop.f32.mrb[60].mxu1  ;;  %v1764_v16 = vld [vmem:[#allocation2 + $0xd0] sm:$0xff] (!%p2043_p2)  ;;  %1833 = vst [vmem:[%s3015_s4 + $0xc0] sm:$0xff] (!%p2043_p2), %v1801_v55 }
 0x328   : > { %v2161_v49 = vpop.f32.mrb[61].mxu1  ;;  %1834 = vst [vmem:[%s3015_s4 + $0xc8] sm:$0xff] (!%p2043_p2), %v1802_v18 }
 0x329   : > { %v2162_v39 = vadd.f32 %v2161_v49, %v2160_v37  ;;  %v2163_v12 = vpop.f32.mrb[62].mxu1  ;;  %1737 = sbr.rel (%p2043_p2) target bundleno = 826 (0x33a), region = 60  ;;  %v1765_v37 = vld [vmem:[#allocation2 + $0xd8] sm:$0xff] (!%p2043_p2)  ;;  %v1803_v49 = vadd.f32 (!%p2043_p2), %v3781_v58, %v1764_v16 }
 0x32a   : > { %v2164_v13 = vpop.f32.mrb[63].mxu1 }
 0x32b   : > { %v1700_v14 = vadd.f32 %v2162_v39, %v1347_v8  ;;  %v2165_v47 = vadd.f32 %v2164_v13, %v2163_v12  ;;  %v1804_v39 = vadd.f32 (!%p2043_p2), %v3781_v58, %v1765_v37  ;;  %1835 = vst [vmem:[%s3015_s4 + $0xd0] sm:$0xff] (!%p2043_p2), %v1803_v49 }
 0x32c   : > { %v1766_v8 = vld [vmem:[#allocation2 + $0xe0] sm:$0xff] (!%p2043_p2) }
 0x32d   : > { %1732 = vst [vmem:[#allocation2 + $0xf0] sm:$0xff] %v1700_v14  ;;  %v1701_v61 = vadd.f32 %v2165_v47, %v1348_v50  ;;  %v1805_v12 = vadd.f32 (!%p2043_p2), %v3781_v58, %v1766_v8  ;;  %1836 = vst [vmem:[%s3015_s4 + $0xd8] sm:$0xff] (!%p2043_p2), %v1804_v39 }
 0x32e   : > { %v1767_v50 = vld [vmem:[#allocation2 + $0xe8] sm:$0xff] (!%p2043_p2) }
 0x32f   : > { %1733 = vst [vmem:[#allocation2 + $0xf8] sm:$0xff] %v1701_v61  ;;  %v1806_v47 = vadd.f32 (!%p2043_p2), %v3781_v58, %v1767_v50  ;;  %1837 = vst [vmem:[%s3015_s4 + $0xe0] sm:$0xff] (!%p2043_p2), %v1805_v12 }
 0x331   : > { %1838 = vst [vmem:[%s3015_s4 + $0xe8] sm:$0xff] %v1806_v47 }
 0x334   : > { %v1768_v13 = vld [vmem:[#allocation2 + $0xf0] sm:$0xff] }
 0x335   : > { %v1807_v61 = vadd.f32 %v3781_v58, %v1768_v13 }
 0x336   : > { %v1769_v14 = vld [vmem:[#allocation2 + $0xf8] sm:$0xff] }
 0x337   : > { %v1808_v17 = vadd.f32 %v3781_v58, %v1769_v14  ;;  %1839 = vst [vmem:[%s3015_s4 + $0xf0] sm:$0xff] %v1807_v61 }
 0x339   : > { %1840 = vst [vmem:[%s3015_s4 + $0xf8] sm:$0xff] %v1808_v17 }
 0x33a PF: > { %s3970_s24 = sld [smem:[#allocation15_spill]]  ;;  %s1855_s8 = sshll.u32 %s3015_s4, 4  ;;  %s3854_s8 = int_to_ptr.vmem [resolvable:$true] %s1855_s8 }
 0x33b   : > { %s3971_s6 = sld [smem:[#allocation23_spill]]  ;;  %s1842_s15 = scalar_lea.sflag [#allocation5], %s2988_s1 }
 0x33c   : > { %s2545_s13 = scalar_lea.vmem %s3854_s8, 4096  ;;  %p3972_p11 = scmp.ne.s32.totalorder %s3957_s14, 0 }
 0x33d   : > { %p2546_p13 = scmp.ne.s32.totalorder %s3854_s8, %s2545_s13  ;;  %s2683_s10 = smov [#allocation9]  }
 0x33e   : > { %s2549_s30 = sshll.u32 %s2683_s10, 4  ;;  %s2550_s30 = int_to_ptr.vmem [resolvable:$false] %s2549_s30 }
 0x33f   : > { %p2547_p6 = pnand %p2546_p13, %p3972_p11  ;;  %s2551_s20 = scalar_lea.vmem %s2550_s30, 8192 }
 0x340   : > { %s2053_s27 = sshll.u32 %s3970_s24, 12  ;;  %p2552_p1 = scmp.lt.s32.totalorder %s3854_s8, %s2550_s30 }
 0x341   : > { %s3851_s7 = scalar_lea.hbm %s3971_s6, %s2053_s27  ;;  %p2548_p5 = pneg %p2547_p6 }
 0x342   : > { %p2553_p0 = scmp.lt.s32.totalorder %s2551_s20, %s2545_s13 }
 0x344   : > { %p2554_p9 = por %p2553_p0, %p2552_p1 }
 0x346   : > { %p2555_p12 = pnand %p2554_p9, %p2548_p5 }
 0x348   : > { %2558 = shalt.err (!%p2555_p12)
}
 0x349   : > { %s2559_s12 = scalar_lea.hbm %s3851_s7, 4096  ;;  %s2563_s17 = scalar_lea.hbm %s3971_s6, 8192 }
 0x34a   : > { %p2560_p3 = scmp.ne.s32.totalorder %s3851_s7, %s2559_s12  ;;  %p2564_p8 = scmp.lt.u32.totalorder %s3851_s7, %s3971_s6 }
 0x34b   : > { %p2565_p10 = scmp.lt.u32.totalorder %s2563_s17, %s2559_s12  ;;  %p2567_p13 = scmp.lt.u32.totalorder %s2559_s12, %s3851_s7 }
 0x34c   : > { %p2561_p4 = pnand %p2560_p3, %p3972_p11 }
 0x34d   : > { %p2566_p2 = por %p2565_p10, %p2564_p8 }
 0x34e   : > { %p2562_p7 = pneg %p2561_p4 }
 0x34f   : > { %p2568_p6 = por %p2567_p13, %p2566_p2 }
 0x351   : > { %p2569_p5 = pnand %p2568_p6, %p2562_p7 }
 0x353   : > { %2572 = shalt.err (!%p2569_p5)
}
 0x354   : > { %s2684_s18 = smov 128   ;;  %s2685_s16 = smov 8  }
 0x355   : > { %2172 = dma.vmem_to_hbm [thread:$0]  (%p3972_p11), %s3854_s8, 4096, %s3851_s7, %s1842_s15, %s2684_s18, %s2684_s18, %s2685_s16  }
 0x356 PF: > { %p2189_p1 = scmp.ge.s32.totalorder %s2671_s28, 2  ;;  %s1870_s24 = sand.u32 1, %s2643_s21  }
 0x357   : > { %p3973_p0 = scmp.ne.s32.totalorder %s3959_s5, 0  ;;  %s1871_s27 = scalar_lea.sflag [#allocation5], %s1870_s24 }
 0x359   : > { %p2185_p9 = pnand %p2189_p1, %p3973_p0 }
 0x35b   : > { %2626 = dma.done.wait (!%p2185_p9), %s1871_s27, 4096  }
 0x35c   : > { %2628 = vsyncadd (!%p2185_p9), %s1871_s27, 4294963200  ;;  %s24_s28 = sadd.s32 1, %s2671_s28   ;;  %s3974_s11 = sld [smem:[#allocation13_spill]] }
 0x35d   : > { %p21_p12 = scmp.ge.s32.totalorder %s24_s28, 6   ;;  %s3975_s20 = sld [smem:[#allocation18_spill]] }
 0x35e   : > { %s3976_s14 = sld [smem:[#allocation14_spill]]  ;;  %s3977_s23 = sld [smem:[#allocation20_spill]] }
 0x35f   : > { %s3978_s25 = sld [smem:[#allocation16_spill]]  ;;  %s3979_s1 = sld [smem:[#allocation17_spill]] }
 0x360   : > { %s3980_s27 = sld [smem:[#allocation19_spill]]  ;;  %s3981_s18 = smov %s2635_s19 }
 0x361   : > { %s3983_s21 = smov %s2647_s22  ;;  %s3985_s24 = smov %s2663_s26 }
 0x362   : > { %s3982_s19 = smov %s3974_s11  ;;  %23 = sbr.rel (!%p21_p12) target bundleno = 15 (0xf), region = 120 }
 0x364   : > { %s3984_s22 = smov %s3976_s14 }
 0x365   : > { %s3986_s26 = smov %s3979_s1 }
 0x369   :  { %1876 = vsyncpa [#allocation4], 1 }
 0x36a   :  { %1878 = vsyncpa [#allocation4 + $0x1], 1 }
 0x36b   :  { %1879 = vsyncpa [#allocation7], 1 }
 0x36c   :  { %1881 = vsyncpa [#allocation7 + $0x1], 1 }
 0x36d   :  { %1882 = vsyncpa [#allocation5], 1 }
 0x36e   :  { %1884 = vsyncpa [#allocation5 + $0x1], 1 }

</bundles_post_ra>
